<compile_context>
chip_gen: v7x
topology: tpu7x:2x2x1
jax: 0.10.0
libtpu: 0.0.40
codegen_flags: <defaults>
</compile_context>

<pallas_src>
import jax
import jax.numpy as jnp
import numpy as np
from jax.experimental import pallas as pl
from jax.experimental.pallas import tpu as pltpu


_OFFS = [(kh, kw) for kh in range(3) for kw in range(3) if not (kh == 1 and kw == 1)]
_DILS = (1, 2, 4, 8, 16)


def _tap_layout(H, W, dilations):
    """Unique (dh, dw) taps shared by all dilated convs; statically-zero taps pruned."""
    offsets = [(0, 0)]                      # tap 0 = shared centre tap
    where = {}
    for d in dilations:
        for (kh, kw) in _OFFS:
            dh, dw = d * (kh - 1), d * (kw - 1)
            if abs(dh) >= H or abs(dw) >= W:
                where[(d, kh, kw)] = None   # reads only zero padding -> drop
            else:
                where[(d, kh, kw)] = len(offsets)
                offsets.append((dh, dw))
    return offsets, where


def _place_cols(w, d, n_taps, where):
    """OIHW (cout, n, 3, 3) -> (cout, n_taps, n): columns at this dilation's taps."""
    cout, n = w.shape[0], w.shape[1]
    cols = jnp.zeros((cout, n_taps, n), w.dtype)
    cols = cols.at[:, 0, :].set(w[:, :, 1, 1])            # shared centre tap
    for (kh, kw) in _OFFS:
        t = where[(d, kh, kw)]
        if t is not None:
            cols = cols.at[:, t, :].set(w[:, :, kh, kw])
    return cols


def _pick_chunk(B, HW, rows):
    """Images per grid step: biggest chunk that fits a conservative VMEM budget."""
    per_img = 4 * HW * rows * 2            # f32, rough x2 for double-buffer/temps
    budget = 24 * (1 << 20)
    c = max(1, min(B, budget // max(per_img, 1)))
    while c > 1 and (B % c != 0 or (c * HW) % 128 != 0):
        c -= 1
    if B % c != 0:
        c = B                              # fall back: whole batch in one step
    return c


def _make_esp_kernel(H, W, chunk_imgs, tap_offsets):
    HW = H * W
    L = chunk_imgs * HW

    def _mod(a, m):
        if (m & (m - 1)) == 0:
            return jnp.bitwise_and(a, m - 1)
        return jax.lax.rem(a, jnp.full_like(a, m))

    def kernel(x_ref, w1t_ref, wbig_ref, scale_ref, shift_ref, alpha_ref, out_ref):
        x = x_ref[...]                                                  # (Cin, L)

        # --- Reduce: 1x1 conv (nIn -> n), one MXU matmul over the whole chunk ---
        out1 = jnp.dot(w1t_ref[...], x, preferred_element_type=jnp.float32)  # (n, L)

        # Per-image flattened index (q) and intra-row column (w_idx), lane axis.
        flat = jax.lax.broadcasted_iota(jnp.int32, (1, L), 1)
        q = _mod(flat, HW)
        w_idx = _mod(flat, W)

        row_masks, col_masks = {}, {}

        def rmask(dh):
            if dh not in row_masks:
                row_masks[dh] = (q < (H - dh) * W) if dh > 0 else (q >= (-dh) * W)
            return row_masks[dh]

        def cmask(dw):
            if dw not in col_masks:
                col_masks[dw] = (w_idx < W - dw) if dw > 0 else (w_idx >= -dw)
            return col_masks[dw]

        # --- im2col slab: one shifted/masked copy of out1 per unique kept tap ---
        taps = [out1]
        for (dh, dw) in tap_offsets[1:]:
            s = dh * W + dw
            rolled = pltpu.roll(out1, (-s) % L, axis=1)     # XLU lane rotate
            if dh != 0 and dw != 0:
                m = jnp.logical_and(rmask(dh), cmask(dw))
            elif dh != 0:
                m = rmask(dh)
            else:
                m = cmask(dw)
            taps.append(jnp.where(m, rolled, 0.0))
        slab = jnp.concatenate(taps, axis=0)                # (n_taps*n, L)

        # --- Split/Transform/Merge: all 5 dilated convs + HFF in ONE matmul ---
        combine = jnp.dot(wbig_ref[...], slab,
                          preferred_element_type=jnp.float32)           # (nOut, L)
        combine = combine + x                 # residual connection (nIn == nOut)

        # --- BR: folded BatchNorm (eval, eps=1e-3) + per-channel PReLU ---
        y = combine * scale_ref[...] + shift_ref[...]
        out_ref[...] = jnp.where(y >= 0.0, y, alpha_ref[...] * y)

    return kernel


def esp_block(x, params):
    """ESP block forward. x: (B, nIn, H, W) NCHW; params use PyTorch layouts."""
    B, Cin, H, W = x.shape
    HW = H * W
    w_c1 = params["w_c1"]                                   # (n, nIn, 1, 1) OIHW
    n = w_c1.shape[0]
    n1 = params["w_d1"].shape[0]
    nOut = n1 + 4 * n
    assert Cin == nOut, "residual connection (add=True) requires nIn == nOut"

    # ---- weight / BN preprocessing (traced once under jit) ----
    tap_offsets, where = _tap_layout(H, W, _DILS)
    n_taps = len(tap_offsets)

    w1t = w_c1.reshape(n, Cin)                              # (n, Cin)
    c1 = _place_cols(params["w_d1"], 1, n_taps, where)
    c2 = _place_cols(params["w_d2"], 2, n_taps, where)
    c4 = _place_cols(params["w_d4"], 4, n_taps, where)
    c8 = _place_cols(params["w_d8"], 8, n_taps, where)
    c16 = _place_cols(params["w_d16"], 16, n_taps, where)
    # HFF folded into the weights: combine = [d1; d2; d2+d4; d2+d4+d8; d2+..+d16]
    wbig = jnp.concatenate([c1, c2, c2 + c4, c2 + c4 + c8, c2 + c4 + c8 + c16],
                           axis=0).reshape(nOut, n_taps * n)

    # Fold BatchNorm2d (running stats, eval mode) into per-channel scale/shift.
    inv_std = jax.lax.rsqrt(params["var"] + 1e-3)
    scale = (params["gamma"] * inv_std).reshape(nOut, 1)
    shift = (params["beta"] - params["mean"] * params["gamma"] * inv_std).reshape(nOut, 1)
    alpha = params["alpha"].reshape(nOut, 1)

    # Lane-dense layout: batch folded onto the lane axis -> (Cin, B*H*W).
    x_lane = jnp.transpose(x, (1, 0, 2, 3)).reshape(Cin, B * HW)

    rows = Cin + n + nOut + n_taps * n
    chunk = _pick_chunk(B, HW, rows)
    L = chunk * HW
    grid = (B // chunk,)

    kernel = _make_esp_kernel(H, W, chunk, tap_offsets)
    consts = (w1t, wbig, scale, shift, alpha)

    def const_spec(a):
        nd = a.ndim
        return pl.BlockSpec(a.shape, lambda i, _nd=nd: (0,) * _nd)

    flops = 2 * B * HW * (Cin * n + (n_taps * n) * nOut)
    bytes_accessed = 4 * (x_lane.size + B * nOut * HW
                          + sum(int(c.size) for c in consts))

    out = pl.pallas_call(
        kernel,
        out_shape=jax.ShapeDtypeStruct((nOut, B * HW), jnp.float32),
        grid_spec=pltpu.PrefetchScalarGridSpec(
            num_scalar_prefetch=0,
            grid=grid,
            in_specs=[pl.BlockSpec((Cin, L), lambda i: (0, i))]
                     + [const_spec(c) for c in consts],
            out_specs=pl.BlockSpec((nOut, L), lambda i: (0, i)),
        ),
        compiler_params=pltpu.CompilerParams(dimension_semantics=("parallel",)),
        cost_estimate=pl.CostEstimate(flops=flops, transcendentals=0,
                                      bytes_accessed=bytes_accessed),
    )(x_lane, *consts)

    return out.reshape(nOut, B, H, W).transpose(1, 0, 2, 3)


def init_params(key, nIn, nOut):
    n = nOut // 5
    n1 = nOut - 4 * n
    ks = jax.random.split(key, 10)
    s = 0.2
    return {
        # conv weights in PyTorch OIHW layout
        "w_c1": s * jax.random.normal(ks[0], (n, nIn, 1, 1), jnp.float32),
        "w_d1": s * jax.random.normal(ks[1], (n1, n, 3, 3), jnp.float32),
        "w_d2": s * jax.random.normal(ks[2], (n, n, 3, 3), jnp.float32),
        "w_d4": s * jax.random.normal(ks[3], (n, n, 3, 3), jnp.float32),
        "w_d8": s * jax.random.normal(ks[4], (n, n, 3, 3), jnp.float32),
        "w_d16": s * jax.random.normal(ks[5], (n, n, 3, 3), jnp.float32),
        # BatchNorm params / running stats (inference mode), PReLU alpha (init 0.25)
        "gamma": 1.0 + 0.1 * jax.random.normal(ks[6], (nOut,), jnp.float32),
        "beta": 0.1 * jax.random.normal(ks[7], (nOut,), jnp.float32),
        "mean": 0.1 * jax.random.normal(ks[8], (nOut,), jnp.float32),
        "var": jax.random.uniform(ks[9], (nOut,), jnp.float32, 0.5, 1.5),
        "alpha": jnp.full((nOut,), 0.25, jnp.float32),
    }


def ref_forward(x, params):
    """Pure-JAX reference (XLA convs), NCHW/OIHW like the PyTorch module."""
    hp = jax.lax.Precision.HIGHEST
    dn = ("NCHW", "OIHW", "NCHW")

    def dconv(inp, w, d):
        return jax.lax.conv_general_dilated(
            inp, w, window_strides=(1, 1), padding=[(d, d), (d, d)],
            rhs_dilation=(d, d), dimension_numbers=dn, precision=hp)

    out1 = jax.lax.conv_general_dilated(x, params["w_c1"], (1, 1), "VALID",
                                        dimension_numbers=dn, precision=hp)
    d1 = dconv(out1, params["w_d1"], 1)
    d2 = dconv(out1, params["w_d2"], 2)
    d4 = dconv(out1, params["w_d4"], 4)
    d8 = dconv(out1, params["w_d8"], 8)
    d16 = dconv(out1, params["w_d16"], 16)
    add1 = d2
    add2 = add1 + d4
    add3 = add2 + d8
    add4 = add3 + d16
    combine = jnp.concatenate([d1, add1, add2, add3, add4], axis=1)
    combine = x + combine

    c = lambda v: v[None, :, None, None]
    y = ((combine - c(params["mean"])) * c(params["gamma"])
         / jnp.sqrt(c(params["var"]) + 1e-3) + c(params["beta"]))
    return jnp.where(y >= 0, y, c(params["alpha"]) * y)


if __name__ == "__main__":
    # nIn == nOut so the residual add is valid (same constraint as the PyTorch module)
    nIn = nOut = 10          # -> n = 2, n1 = 2
    B, H, W = 2, 16, 16

    key = jax.random.PRNGKey(0)
    kx, kp = jax.random.split(key)
    x = jax.random.normal(kx, (B, nIn, H, W), jnp.float32)   # NCHW, like PyTorch
    params = init_params(kp, nIn, nOut)

    out = jax.jit(esp_block)(x, params)
    out = jax.block_until_ready(out)

    ref = ref_forward(x, params)
    np.testing.assert_allclose(np.asarray(out), np.asarray(ref), rtol=2e-2, atol=2e-2)

    print("KERNEL_OK")
</pallas_src>

<mosaic_0001>
module attributes {stable_mosaic.version = 11 : i64} {
  func.func @kernel(%arg0: i32, %arg1: memref<10x512xf32, #tpu.memory_space<vmem>>, %arg2: memref<2x10xf32, #tpu.memory_space<vmem>>, %arg3: memref<10x66xf32, #tpu.memory_space<vmem>>, %arg4: memref<10x1xf32, #tpu.memory_space<vmem>>, %arg5: memref<10x1xf32, #tpu.memory_space<vmem>>, %arg6: memref<10x1xf32, #tpu.memory_space<vmem>>, %arg7: memref<10x512xf32, #tpu.memory_space<vmem>>) attributes {dimension_semantics = [#tpu.dimension_semantics<parallel>], iteration_bounds = array<i64: 1>, scalar_prefetch = 0 : i64, scratch_operands = 0 : i64, tpu.core_type = #tpu.core_type<tc>, window_params = [{transform_indices = @transform_0, window_bounds = array<i64: 10, 512>}, {pipeline_mode = #tpu.pipeline_mode<synchronous>, transform_indices = @transform_1, window_bounds = array<i64: 2, 10>}, {pipeline_mode = #tpu.pipeline_mode<synchronous>, transform_indices = @transform_2, window_bounds = array<i64: 10, 66>}, {pipeline_mode = #tpu.pipeline_mode<synchronous>, transform_indices = @transform_3, window_bounds = array<i64: 10, 1>}, {pipeline_mode = #tpu.pipeline_mode<synchronous>, transform_indices = @transform_4, window_bounds = array<i64: 10, 1>}, {pipeline_mode = #tpu.pipeline_mode<synchronous>, transform_indices = @transform_5, window_bounds = array<i64: 10, 1>}, {transform_indices = @transform_6, window_bounds = array<i64: 10, 512>}]} {
    %c0 = arith.constant 0 : index
    %c0_0 = arith.constant 0 : index
    %0 = vector.load %arg1[%c0, %c0_0] : memref<10x512xf32, #tpu.memory_space<vmem>>, vector<10x512xf32>
    %c0_1 = arith.constant 0 : index
    %c0_2 = arith.constant 0 : index
    %1 = vector.load %arg2[%c0_1, %c0_2] : memref<2x10xf32, #tpu.memory_space<vmem>>, vector<2x10xf32>
    %cst = arith.constant dense<0.000000e+00> : vector<2x512xf32>
    %2 = tpu.matmul %1, %0, %cst {dimension_numbers = #tpu.dot_dimension_numbers<[1], [0], [0], [1], [0, 0, 1, 1], [], []>} : vector<2x10xf32>, vector<10x512xf32>, vector<2x512xf32> -> vector<2x512xf32>
    %3 = tpu.iota {dimensions = array<i32: 1>} : vector<1x512xi32>
    %c255_i32 = arith.constant 255 : i32
    %4 = vector.broadcast %c255_i32 : i32 to vector<1x512xi32>
    %5 = arith.andi %3, %4 : vector<1x512xi32>
    %c15_i32 = arith.constant 15 : i32
    %6 = vector.broadcast %c15_i32 : i32 to vector<1x512xi32>
    %7 = arith.andi %3, %6 : vector<1x512xi32>
    %c17_i32 = arith.constant 17 : i32
    %8 = tpu.dynamic_rotate %2 by %c17_i32 dim 1 : vector<2x512xf32>, i32 -> vector<2x512xf32>
    %c16_i32 = arith.constant 16 : i32
    %9 = vector.broadcast %c16_i32 : i32 to vector<1x512xi32>
    %10 = arith.cmpi sge, %5, %9 : vector<1x512xi32>
    %c1_i32 = arith.constant 1 : i32
    %11 = vector.broadcast %c1_i32 : i32 to vector<1x512xi32>
    %12 = arith.cmpi sge, %7, %11 : vector<1x512xi32>
    %13 = arith.andi %10, %12 : vector<1x512xi1>
    %cst_3 = arith.constant 0.000000e+00 : f32
    %14 = vector.shape_cast %13 : vector<1x512xi1> to vector<1x512xi1>
    %15 = vector.broadcast %14 : vector<1x512xi1> to vector<2x512xi1>
    %16 = vector.broadcast %cst_3 : f32 to vector<2x512xf32>
    %17 = arith.select %15, %8, %16 : vector<2x512xi1>, vector<2x512xf32>
    %c16_i32_4 = arith.constant 16 : i32
    %18 = tpu.dynamic_rotate %2 by %c16_i32_4 dim 1 : vector<2x512xf32>, i32 -> vector<2x512xf32>
    %cst_5 = arith.constant 0.000000e+00 : f32
    %19 = vector.shape_cast %10 : vector<1x512xi1> to vector<1x512xi1>
    %20 = vector.broadcast %19 : vector<1x512xi1> to vector<2x512xi1>
    %21 = vector.broadcast %cst_5 : f32 to vector<2x512xf32>
    %22 = arith.select %20, %18, %21 : vector<2x512xi1>, vector<2x512xf32>
    %c15_i32_6 = arith.constant 15 : i32
    %23 = tpu.dynamic_rotate %2 by %c15_i32_6 dim 1 : vector<2x512xf32>, i32 -> vector<2x512xf32>
    %c15_i32_7 = arith.constant 15 : i32
    %24 = vector.broadcast %c15_i32_7 : i32 to vector<1x512xi32>
    %25 = arith.cmpi slt, %7, %24 : vector<1x512xi32>
    %26 = arith.andi %10, %25 : vector<1x512xi1>
    %cst_8 = arith.constant 0.000000e+00 : f32
    %27 = vector.shape_cast %26 : vector<1x512xi1> to vector<1x512xi1>
    %28 = vector.broadcast %27 : vector<1x512xi1> to vector<2x512xi1>
    %29 = vector.broadcast %cst_8 : f32 to vector<2x512xf32>
    %30 = arith.select %28, %23, %29 : vector<2x512xi1>, vector<2x512xf32>
    %c1_i32_9 = arith.constant 1 : i32
    %31 = tpu.dynamic_rotate %2 by %c1_i32_9 dim 1 : vector<2x512xf32>, i32 -> vector<2x512xf32>
    %cst_10 = arith.constant 0.000000e+00 : f32
    %32 = vector.shape_cast %12 : vector<1x512xi1> to vector<1x512xi1>
    %33 = vector.broadcast %32 : vector<1x512xi1> to vector<2x512xi1>
    %34 = vector.broadcast %cst_10 : f32 to vector<2x512xf32>
    %35 = arith.select %33, %31, %34 : vector<2x512xi1>, vector<2x512xf32>
    %c511_i32 = arith.constant 511 : i32
    %36 = tpu.dynamic_rotate %2 by %c511_i32 dim 1 : vector<2x512xf32>, i32 -> vector<2x512xf32>
    %cst_11 = arith.constant 0.000000e+00 : f32
    %37 = vector.shape_cast %25 : vector<1x512xi1> to vector<1x512xi1>
    %38 = vector.broadcast %37 : vector<1x512xi1> to vector<2x512xi1>
    %39 = vector.broadcast %cst_11 : f32 to vector<2x512xf32>
    %40 = arith.select %38, %36, %39 : vector<2x512xi1>, vector<2x512xf32>
    %c497_i32 = arith.constant 497 : i32
    %41 = tpu.dynamic_rotate %2 by %c497_i32 dim 1 : vector<2x512xf32>, i32 -> vector<2x512xf32>
    %c240_i32 = arith.constant 240 : i32
    %42 = vector.broadcast %c240_i32 : i32 to vector<1x512xi32>
    %43 = arith.cmpi slt, %5, %42 : vector<1x512xi32>
    %44 = arith.andi %43, %12 : vector<1x512xi1>
    %cst_12 = arith.constant 0.000000e+00 : f32
    %45 = vector.shape_cast %44 : vector<1x512xi1> to vector<1x512xi1>
    %46 = vector.broadcast %45 : vector<1x512xi1> to vector<2x512xi1>
    %47 = vector.broadcast %cst_12 : f32 to vector<2x512xf32>
    %48 = arith.select %46, %41, %47 : vector<2x512xi1>, vector<2x512xf32>
    %c496_i32 = arith.constant 496 : i32
    %49 = tpu.dynamic_rotate %2 by %c496_i32 dim 1 : vector<2x512xf32>, i32 -> vector<2x512xf32>
    %cst_13 = arith.constant 0.000000e+00 : f32
    %50 = vector.shape_cast %43 : vector<1x512xi1> to vector<1x512xi1>
    %51 = vector.broadcast %50 : vector<1x512xi1> to vector<2x512xi1>
    %52 = vector.broadcast %cst_13 : f32 to vector<2x512xf32>
    %53 = arith.select %51, %49, %52 : vector<2x512xi1>, vector<2x512xf32>
    %c495_i32 = arith.constant 495 : i32
    %54 = tpu.dynamic_rotate %2 by %c495_i32 dim 1 : vector<2x512xf32>, i32 -> vector<2x512xf32>
    %55 = arith.andi %43, %25 : vector<1x512xi1>
    %cst_14 = arith.constant 0.000000e+00 : f32
    %56 = vector.shape_cast %55 : vector<1x512xi1> to vector<1x512xi1>
    %57 = vector.broadcast %56 : vector<1x512xi1> to vector<2x512xi1>
    %58 = vector.broadcast %cst_14 : f32 to vector<2x512xf32>
    %59 = arith.select %57, %54, %58 : vector<2x512xi1>, vector<2x512xf32>
    %c34_i32 = arith.constant 34 : i32
    %60 = tpu.dynamic_rotate %2 by %c34_i32 dim 1 : vector<2x512xf32>, i32 -> vector<2x512xf32>
    %c32_i32 = arith.constant 32 : i32
    %61 = vector.broadcast %c32_i32 : i32 to vector<1x512xi32>
    %62 = arith.cmpi sge, %5, %61 : vector<1x512xi32>
    %c2_i32 = arith.constant 2 : i32
    %63 = vector.broadcast %c2_i32 : i32 to vector<1x512xi32>
    %64 = arith.cmpi sge, %7, %63 : vector<1x512xi32>
    %65 = arith.andi %62, %64 : vector<1x512xi1>
    %cst_15 = arith.constant 0.000000e+00 : f32
    %66 = vector.shape_cast %65 : vector<1x512xi1> to vector<1x512xi1>
    %67 = vector.broadcast %66 : vector<1x512xi1> to vector<2x512xi1>
    %68 = vector.broadcast %cst_15 : f32 to vector<2x512xf32>
    %69 = arith.select %67, %60, %68 : vector<2x512xi1>, vector<2x512xf32>
    %c32_i32_16 = arith.constant 32 : i32
    %70 = tpu.dynamic_rotate %2 by %c32_i32_16 dim 1 : vector<2x512xf32>, i32 -> vector<2x512xf32>
    %cst_17 = arith.constant 0.000000e+00 : f32
    %71 = vector.shape_cast %62 : vector<1x512xi1> to vector<1x512xi1>
    %72 = vector.broadcast %71 : vector<1x512xi1> to vector<2x512xi1>
    %73 = vector.broadcast %cst_17 : f32 to vector<2x512xf32>
    %74 = arith.select %72, %70, %73 : vector<2x512xi1>, vector<2x512xf32>
    %c30_i32 = arith.constant 30 : i32
    %75 = tpu.dynamic_rotate %2 by %c30_i32 dim 1 : vector<2x512xf32>, i32 -> vector<2x512xf32>
    %c14_i32 = arith.constant 14 : i32
    %76 = vector.broadcast %c14_i32 : i32 to vector<1x512xi32>
    %77 = arith.cmpi slt, %7, %76 : vector<1x512xi32>
    %78 = arith.andi %62, %77 : vector<1x512xi1>
    %cst_18 = arith.constant 0.000000e+00 : f32
    %79 = vector.shape_cast %78 : vector<1x512xi1> to vector<1x512xi1>
    %80 = vector.broadcast %79 : vector<1x512xi1> to vector<2x512xi1>
    %81 = vector.broadcast %cst_18 : f32 to vector<2x512xf32>
    %82 = arith.select %80, %75, %81 : vector<2x512xi1>, vector<2x512xf32>
    %c2_i32_19 = arith.constant 2 : i32
    %83 = tpu.dynamic_rotate %2 by %c2_i32_19 dim 1 : vector<2x512xf32>, i32 -> vector<2x512xf32>
    %cst_20 = arith.constant 0.000000e+00 : f32
    %84 = vector.shape_cast %64 : vector<1x512xi1> to vector<1x512xi1>
    %85 = vector.broadcast %84 : vector<1x512xi1> to vector<2x512xi1>
    %86 = vector.broadcast %cst_20 : f32 to vector<2x512xf32>
    %87 = arith.select %85, %83, %86 : vector<2x512xi1>, vector<2x512xf32>
    %c510_i32 = arith.constant 510 : i32
    %88 = tpu.dynamic_rotate %2 by %c510_i32 dim 1 : vector<2x512xf32>, i32 -> vector<2x512xf32>
    %cst_21 = arith.constant 0.000000e+00 : f32
    %89 = vector.shape_cast %77 : vector<1x512xi1> to vector<1x512xi1>
    %90 = vector.broadcast %89 : vector<1x512xi1> to vector<2x512xi1>
    %91 = vector.broadcast %cst_21 : f32 to vector<2x512xf32>
    %92 = arith.select %90, %88, %91 : vector<2x512xi1>, vector<2x512xf32>
    %c482_i32 = arith.constant 482 : i32
    %93 = tpu.dynamic_rotate %2 by %c482_i32 dim 1 : vector<2x512xf32>, i32 -> vector<2x512xf32>
    %c224_i32 = arith.constant 224 : i32
    %94 = vector.broadcast %c224_i32 : i32 to vector<1x512xi32>
    %95 = arith.cmpi slt, %5, %94 : vector<1x512xi32>
    %96 = arith.andi %95, %64 : vector<1x512xi1>
    %cst_22 = arith.constant 0.000000e+00 : f32
    %97 = vector.shape_cast %96 : vector<1x512xi1> to vector<1x512xi1>
    %98 = vector.broadcast %97 : vector<1x512xi1> to vector<2x512xi1>
    %99 = vector.broadcast %cst_22 : f32 to vector<2x512xf32>
    %100 = arith.select %98, %93, %99 : vector<2x512xi1>, vector<2x512xf32>
    %c480_i32 = arith.constant 480 : i32
    %101 = tpu.dynamic_rotate %2 by %c480_i32 dim 1 : vector<2x512xf32>, i32 -> vector<2x512xf32>
    %cst_23 = arith.constant 0.000000e+00 : f32
    %102 = vector.shape_cast %95 : vector<1x512xi1> to vector<1x512xi1>
    %103 = vector.broadcast %102 : vector<1x512xi1> to vector<2x512xi1>
    %104 = vector.broadcast %cst_23 : f32 to vector<2x512xf32>
    %105 = arith.select %103, %101, %104 : vector<2x512xi1>, vector<2x512xf32>
    %c478_i32 = arith.constant 478 : i32
    %106 = tpu.dynamic_rotate %2 by %c478_i32 dim 1 : vector<2x512xf32>, i32 -> vector<2x512xf32>
    %107 = arith.andi %95, %77 : vector<1x512xi1>
    %cst_24 = arith.constant 0.000000e+00 : f32
    %108 = vector.shape_cast %107 : vector<1x512xi1> to vector<1x512xi1>
    %109 = vector.broadcast %108 : vector<1x512xi1> to vector<2x512xi1>
    %110 = vector.broadcast %cst_24 : f32 to vector<2x512xf32>
    %111 = arith.select %109, %106, %110 : vector<2x512xi1>, vector<2x512xf32>
    %c68_i32 = arith.constant 68 : i32
    %112 = tpu.dynamic_rotate %2 by %c68_i32 dim 1 : vector<2x512xf32>, i32 -> vector<2x512xf32>
    %c64_i32 = arith.constant 64 : i32
    %113 = vector.broadcast %c64_i32 : i32 to vector<1x512xi32>
    %114 = arith.cmpi sge, %5, %113 : vector<1x512xi32>
    %c4_i32 = arith.constant 4 : i32
    %115 = vector.broadcast %c4_i32 : i32 to vector<1x512xi32>
    %116 = arith.cmpi sge, %7, %115 : vector<1x512xi32>
    %117 = arith.andi %114, %116 : vector<1x512xi1>
    %cst_25 = arith.constant 0.000000e+00 : f32
    %118 = vector.shape_cast %117 : vector<1x512xi1> to vector<1x512xi1>
    %119 = vector.broadcast %118 : vector<1x512xi1> to vector<2x512xi1>
    %120 = vector.broadcast %cst_25 : f32 to vector<2x512xf32>
    %121 = arith.select %119, %112, %120 : vector<2x512xi1>, vector<2x512xf32>
    %c64_i32_26 = arith.constant 64 : i32
    %122 = tpu.dynamic_rotate %2 by %c64_i32_26 dim 1 : vector<2x512xf32>, i32 -> vector<2x512xf32>
    %cst_27 = arith.constant 0.000000e+00 : f32
    %123 = vector.shape_cast %114 : vector<1x512xi1> to vector<1x512xi1>
    %124 = vector.broadcast %123 : vector<1x512xi1> to vector<2x512xi1>
    %125 = vector.broadcast %cst_27 : f32 to vector<2x512xf32>
    %126 = arith.select %124, %122, %125 : vector<2x512xi1>, vector<2x512xf32>
    %c60_i32 = arith.constant 60 : i32
    %127 = tpu.dynamic_rotate %2 by %c60_i32 dim 1 : vector<2x512xf32>, i32 -> vector<2x512xf32>
    %c12_i32 = arith.constant 12 : i32
    %128 = vector.broadcast %c12_i32 : i32 to vector<1x512xi32>
    %129 = arith.cmpi slt, %7, %128 : vector<1x512xi32>
    %130 = arith.andi %114, %129 : vector<1x512xi1>
    %cst_28 = arith.constant 0.000000e+00 : f32
    %131 = vector.shape_cast %130 : vector<1x512xi1> to vector<1x512xi1>
    %132 = vector.broadcast %131 : vector<1x512xi1> to vector<2x512xi1>
    %133 = vector.broadcast %cst_28 : f32 to vector<2x512xf32>
    %134 = arith.select %132, %127, %133 : vector<2x512xi1>, vector<2x512xf32>
    %c4_i32_29 = arith.constant 4 : i32
    %135 = tpu.dynamic_rotate %2 by %c4_i32_29 dim 1 : vector<2x512xf32>, i32 -> vector<2x512xf32>
    %cst_30 = arith.constant 0.000000e+00 : f32
    %136 = vector.shape_cast %116 : vector<1x512xi1> to vector<1x512xi1>
    %137 = vector.broadcast %136 : vector<1x512xi1> to vector<2x512xi1>
    %138 = vector.broadcast %cst_30 : f32 to vector<2x512xf32>
    %139 = arith.select %137, %135, %138 : vector<2x512xi1>, vector<2x512xf32>
    %c508_i32 = arith.constant 508 : i32
    %140 = tpu.dynamic_rotate %2 by %c508_i32 dim 1 : vector<2x512xf32>, i32 -> vector<2x512xf32>
    %cst_31 = arith.constant 0.000000e+00 : f32
    %141 = vector.shape_cast %129 : vector<1x512xi1> to vector<1x512xi1>
    %142 = vector.broadcast %141 : vector<1x512xi1> to vector<2x512xi1>
    %143 = vector.broadcast %cst_31 : f32 to vector<2x512xf32>
    %144 = arith.select %142, %140, %143 : vector<2x512xi1>, vector<2x512xf32>
    %c452_i32 = arith.constant 452 : i32
    %145 = tpu.dynamic_rotate %2 by %c452_i32 dim 1 : vector<2x512xf32>, i32 -> vector<2x512xf32>
    %c192_i32 = arith.constant 192 : i32
    %146 = vector.broadcast %c192_i32 : i32 to vector<1x512xi32>
    %147 = arith.cmpi slt, %5, %146 : vector<1x512xi32>
    %148 = arith.andi %147, %116 : vector<1x512xi1>
    %cst_32 = arith.constant 0.000000e+00 : f32
    %149 = vector.shape_cast %148 : vector<1x512xi1> to vector<1x512xi1>
    %150 = vector.broadcast %149 : vector<1x512xi1> to vector<2x512xi1>
    %151 = vector.broadcast %cst_32 : f32 to vector<2x512xf32>
    %152 = arith.select %150, %145, %151 : vector<2x512xi1>, vector<2x512xf32>
    %c448_i32 = arith.constant 448 : i32
    %153 = tpu.dynamic_rotate %2 by %c448_i32 dim 1 : vector<2x512xf32>, i32 -> vector<2x512xf32>
    %cst_33 = arith.constant 0.000000e+00 : f32
    %154 = vector.shape_cast %147 : vector<1x512xi1> to vector<1x512xi1>
    %155 = vector.broadcast %154 : vector<1x512xi1> to vector<2x512xi1>
    %156 = vector.broadcast %cst_33 : f32 to vector<2x512xf32>
    %157 = arith.select %155, %153, %156 : vector<2x512xi1>, vector<2x512xf32>
    %c444_i32 = arith.constant 444 : i32
    %158 = tpu.dynamic_rotate %2 by %c444_i32 dim 1 : vector<2x512xf32>, i32 -> vector<2x512xf32>
    %159 = arith.andi %147, %129 : vector<1x512xi1>
    %cst_34 = arith.constant 0.000000e+00 : f32
    %160 = vector.shape_cast %159 : vector<1x512xi1> to vector<1x512xi1>
    %161 = vector.broadcast %160 : vector<1x512xi1> to vector<2x512xi1>
    %162 = vector.broadcast %cst_34 : f32 to vector<2x512xf32>
    %163 = arith.select %161, %158, %162 : vector<2x512xi1>, vector<2x512xf32>
    %c136_i32 = arith.constant 136 : i32
    %164 = tpu.dynamic_rotate %2 by %c136_i32 dim 1 : vector<2x512xf32>, i32 -> vector<2x512xf32>
    %c128_i32 = arith.constant 128 : i32
    %165 = vector.broadcast %c128_i32 : i32 to vector<1x512xi32>
    %166 = arith.cmpi sge, %5, %165 : vector<1x512xi32>
    %c8_i32 = arith.constant 8 : i32
    %167 = vector.broadcast %c8_i32 : i32 to vector<1x512xi32>
    %168 = arith.cmpi sge, %7, %167 : vector<1x512xi32>
    %169 = arith.andi %166, %168 : vector<1x512xi1>
    %cst_35 = arith.constant 0.000000e+00 : f32
    %170 = vector.shape_cast %169 : vector<1x512xi1> to vector<1x512xi1>
    %171 = vector.broadcast %170 : vector<1x512xi1> to vector<2x512xi1>
    %172 = vector.broadcast %cst_35 : f32 to vector<2x512xf32>
    %173 = arith.select %171, %164, %172 : vector<2x512xi1>, vector<2x512xf32>
    %c128_i32_36 = arith.constant 128 : i32
    %174 = tpu.dynamic_rotate %2 by %c128_i32_36 dim 1 : vector<2x512xf32>, i32 -> vector<2x512xf32>
    %cst_37 = arith.constant 0.000000e+00 : f32
    %175 = vector.shape_cast %166 : vector<1x512xi1> to vector<1x512xi1>
    %176 = vector.broadcast %175 : vector<1x512xi1> to vector<2x512xi1>
    %177 = vector.broadcast %cst_37 : f32 to vector<2x512xf32>
    %178 = arith.select %176, %174, %177 : vector<2x512xi1>, vector<2x512xf32>
    %c120_i32 = arith.constant 120 : i32
    %179 = tpu.dynamic_rotate %2 by %c120_i32 dim 1 : vector<2x512xf32>, i32 -> vector<2x512xf32>
    %c8_i32_38 = arith.constant 8 : i32
    %180 = vector.broadcast %c8_i32_38 : i32 to vector<1x512xi32>
    %181 = arith.cmpi slt, %7, %180 : vector<1x512xi32>
    %182 = arith.andi %166, %181 : vector<1x512xi1>
    %cst_39 = arith.constant 0.000000e+00 : f32
    %183 = vector.shape_cast %182 : vector<1x512xi1> to vector<1x512xi1>
    %184 = vector.broadcast %183 : vector<1x512xi1> to vector<2x512xi1>
    %185 = vector.broadcast %cst_39 : f32 to vector<2x512xf32>
    %186 = arith.select %184, %179, %185 : vector<2x512xi1>, vector<2x512xf32>
    %c8_i32_40 = arith.constant 8 : i32
    %187 = tpu.dynamic_rotate %2 by %c8_i32_40 dim 1 : vector<2x512xf32>, i32 -> vector<2x512xf32>
    %cst_41 = arith.constant 0.000000e+00 : f32
    %188 = vector.shape_cast %168 : vector<1x512xi1> to vector<1x512xi1>
    %189 = vector.broadcast %188 : vector<1x512xi1> to vector<2x512xi1>
    %190 = vector.broadcast %cst_41 : f32 to vector<2x512xf32>
    %191 = arith.select %189, %187, %190 : vector<2x512xi1>, vector<2x512xf32>
    %c504_i32 = arith.constant 504 : i32
    %192 = tpu.dynamic_rotate %2 by %c504_i32 dim 1 : vector<2x512xf32>, i32 -> vector<2x512xf32>
    %cst_42 = arith.constant 0.000000e+00 : f32
    %193 = vector.shape_cast %181 : vector<1x512xi1> to vector<1x512xi1>
    %194 = vector.broadcast %193 : vector<1x512xi1> to vector<2x512xi1>
    %195 = vector.broadcast %cst_42 : f32 to vector<2x512xf32>
    %196 = arith.select %194, %192, %195 : vector<2x512xi1>, vector<2x512xf32>
    %c392_i32 = arith.constant 392 : i32
    %197 = tpu.dynamic_rotate %2 by %c392_i32 dim 1 : vector<2x512xf32>, i32 -> vector<2x512xf32>
    %c128_i32_43 = arith.constant 128 : i32
    %198 = vector.broadcast %c128_i32_43 : i32 to vector<1x512xi32>
    %199 = arith.cmpi slt, %5, %198 : vector<1x512xi32>
    %200 = arith.andi %199, %168 : vector<1x512xi1>
    %cst_44 = arith.constant 0.000000e+00 : f32
    %201 = vector.shape_cast %200 : vector<1x512xi1> to vector<1x512xi1>
    %202 = vector.broadcast %201 : vector<1x512xi1> to vector<2x512xi1>
    %203 = vector.broadcast %cst_44 : f32 to vector<2x512xf32>
    %204 = arith.select %202, %197, %203 : vector<2x512xi1>, vector<2x512xf32>
    %c384_i32 = arith.constant 384 : i32
    %205 = tpu.dynamic_rotate %2 by %c384_i32 dim 1 : vector<2x512xf32>, i32 -> vector<2x512xf32>
    %cst_45 = arith.constant 0.000000e+00 : f32
    %206 = vector.shape_cast %199 : vector<1x512xi1> to vector<1x512xi1>
    %207 = vector.broadcast %206 : vector<1x512xi1> to vector<2x512xi1>
    %208 = vector.broadcast %cst_45 : f32 to vector<2x512xf32>
    %209 = arith.select %207, %205, %208 : vector<2x512xi1>, vector<2x512xf32>
    %c376_i32 = arith.constant 376 : i32
    %210 = tpu.dynamic_rotate %2 by %c376_i32 dim 1 : vector<2x512xf32>, i32 -> vector<2x512xf32>
    %211 = arith.andi %199, %181 : vector<1x512xi1>
    %cst_46 = arith.constant 0.000000e+00 : f32
    %212 = vector.shape_cast %211 : vector<1x512xi1> to vector<1x512xi1>
    %213 = vector.broadcast %212 : vector<1x512xi1> to vector<2x512xi1>
    %214 = vector.broadcast %cst_46 : f32 to vector<2x512xf32>
    %215 = arith.select %213, %210, %214 : vector<2x512xi1>, vector<2x512xf32>
    %216 = tpu.concatenate %2, %17, %22, %30, %35, %40, %48, %53, %59, %69, %74, %82, %87, %92, %100, %105 in 0 : vector<2x512xf32>, vector<2x512xf32>, vector<2x512xf32>, vector<2x512xf32>, vector<2x512xf32>, vector<2x512xf32>, vector<2x512xf32>, vector<2x512xf32>, vector<2x512xf32>, vector<2x512xf32>, vector<2x512xf32>, vector<2x512xf32>, vector<2x512xf32>, vector<2x512xf32>, vector<2x512xf32>, vector<2x512xf32> -> vector<32x512xf32>
    %217 = tpu.concatenate %111, %121, %126, %134, %139, %144, %152, %157, %163, %173, %178, %186, %191, %196, %204, %209 in 0 : vector<2x512xf32>, vector<2x512xf32>, vector<2x512xf32>, vector<2x512xf32>, vector<2x512xf32>, vector<2x512xf32>, vector<2x512xf32>, vector<2x512xf32>, vector<2x512xf32>, vector<2x512xf32>, vector<2x512xf32>, vector<2x512xf32>, vector<2x512xf32>, vector<2x512xf32>, vector<2x512xf32>, vector<2x512xf32> -> vector<32x512xf32>
    %218 = tpu.concatenate %216, %217, %215 in 0 : vector<32x512xf32>, vector<32x512xf32>, vector<2x512xf32> -> vector<66x512xf32>
    %c0_47 = arith.constant 0 : index
    %c0_48 = arith.constant 0 : index
    %219 = vector.load %arg3[%c0_47, %c0_48] : memref<10x66xf32, #tpu.memory_space<vmem>>, vector<10x66xf32>
    %cst_49 = arith.constant dense<0.000000e+00> : vector<10x512xf32>
    %220 = tpu.matmul %219, %218, %cst_49 {dimension_numbers = #tpu.dot_dimension_numbers<[1], [0], [0], [1], [0, 0, 1, 1], [], []>} : vector<10x66xf32>, vector<66x512xf32>, vector<10x512xf32> -> vector<10x512xf32>
    %221 = arith.addf %220, %0 : vector<10x512xf32>
    %c0_50 = arith.constant 0 : index
    %c0_51 = arith.constant 0 : index
    %222 = vector.load %arg4[%c0_50, %c0_51] : memref<10x1xf32, #tpu.memory_space<vmem>>, vector<10x1xf32>
    %223 = vector.broadcast %222 : vector<10x1xf32> to vector<10x512xf32>
    %224 = arith.mulf %221, %223 : vector<10x512xf32>
    %c0_52 = arith.constant 0 : index
    %c0_53 = arith.constant 0 : index
    %225 = vector.load %arg5[%c0_52, %c0_53] : memref<10x1xf32, #tpu.memory_space<vmem>>, vector<10x1xf32>
    %226 = vector.broadcast %225 : vector<10x1xf32> to vector<10x512xf32>
    %227 = arith.addf %224, %226 : vector<10x512xf32>
    %cst_54 = arith.constant 0.000000e+00 : f32
    %228 = vector.broadcast %cst_54 : f32 to vector<10x512xf32>
    %229 = arith.cmpf oge, %227, %228 : vector<10x512xf32>
    %c0_55 = arith.constant 0 : index
    %c0_56 = arith.constant 0 : index
    %230 = vector.load %arg6[%c0_55, %c0_56] : memref<10x1xf32, #tpu.memory_space<vmem>>, vector<10x1xf32>
    %231 = vector.broadcast %230 : vector<10x1xf32> to vector<10x512xf32>
    %232 = arith.mulf %231, %227 : vector<10x512xf32>
    %233 = arith.select %229, %227, %232 : vector<10x512xi1>, vector<10x512xf32>
    %c0_57 = arith.constant 0 : index
    %c0_58 = arith.constant 0 : index
    %234 = vector.load %arg7[%c0_57, %c0_58] : memref<10x512xf32, #tpu.memory_space<vmem>>, vector<10x512xf32>
    tpu.vector_store %arg7[%c0_57, %c0_58], %233 {strides = array<i32>} : memref<10x512xf32, #tpu.memory_space<vmem>>, vector<10x512xf32>,
    return
  }
  func.func @transform_0(%arg0: i32) -> (i32, i32) {
    %c0_i32 = arith.constant 0 : i32
    %c0_i32_0 = arith.constant 0 : i32
    return %c0_i32, %arg0 : i32, i32
  }
  func.func @transform_1(%arg0: i32) -> (i32, i32) {
    %c0_i32 = arith.constant 0 : i32
    %c0_i32_0 = arith.constant 0 : i32
    %c0_i32_1 = arith.constant 0 : i32
    return %c0_i32, %c0_i32_0 : i32, i32
  }
  func.func @transform_2(%arg0: i32) -> (i32, i32) {
    %c0_i32 = arith.constant 0 : i32
    %c0_i32_0 = arith.constant 0 : i32
    %c0_i32_1 = arith.constant 0 : i32
    return %c0_i32, %c0_i32_0 : i32, i32
  }
  func.func @transform_3(%arg0: i32) -> (i32, i32) {
    %c0_i32 = arith.constant 0 : i32
    %c0_i32_0 = arith.constant 0 : i32
    %c0_i32_1 = arith.constant 0 : i32
    return %c0_i32, %c0_i32_0 : i32, i32
  }
  func.func @transform_4(%arg0: i32) -> (i32, i32) {
    %c0_i32 = arith.constant 0 : i32
    %c0_i32_0 = arith.constant 0 : i32
    %c0_i32_1 = arith.constant 0 : i32
    return %c0_i32, %c0_i32_0 : i32, i32
  }
  func.func @transform_5(%arg0: i32) -> (i32, i32) {
    %c0_i32 = arith.constant 0 : i32
    %c0_i32_0 = arith.constant 0 : i32
    %c0_i32_1 = arith.constant 0 : i32
    return %c0_i32, %c0_i32_0 : i32, i32
  }
  func.func @transform_6(%arg0: i32) -> (i32, i32) {
    %c0_i32 = arith.constant 0 : i32
    %c0_i32_0 = arith.constant 0 : i32
    return %c0_i32, %arg0 : i32, i32
  }
}

</mosaic_0001>

<bundles_post_ra>
// kernel: esp_block.1
= control target key start
LH: loop header
LB: loop body
LE: loop exit
PB: predicated region body
PF: predicated region fallthrough
CT: control target
= control target key end

     0   :  { %vm3435_vm0 = vcmask 1041408   ;;  %vm1976_vm1 = vmmov 1   ;;  %v3442_v3 = vmov 0.0   ;;  %vm32_vm3 = vcmask 80896   ;;  %s1978_s15 = smov 120   ;;  %s1980_s16 = smov 17   ;;  %s3428_s0 = inlined_call_operand.vmem [shape: f32[10,512], index: 0, kind: input, shape index: {}]   ;;  %s3429_s1 = inlined_call_operand.vmem [shape: f32[2,10], index: 1, kind: input, shape index: {}]   ;;  %s3430_s3 = inlined_call_operand.vmem [shape: f32[10,1], index: 3, kind: input, shape index: {}]   ;;  %s3431_s4 = inlined_call_operand.vmem [shape: f32[10,1], index: 4, kind: input, shape index: {}]   ;;  %s3432_s5 = inlined_call_operand.vmem [shape: f32[10,1], index: 5, kind: input, shape index: {}]   ;;  %s3433_s2 = inlined_call_operand.vmem [shape: f32[10,66], index: 2, kind: input, shape index: {}]   ;;  %s3434_s6 = inlined_call_operand.vmem [shape: f32[10,512], index: 6, kind: output, shape index: {}]  }
   0x1   :  { %v24_v0 = vld [vmem:[%s3428_s0 + $0x8] sm:$0xff]  ;;  %vm2044_vm2 = vmpackc.low %vm3435_vm0, %vm1976_vm1  ;;  %113 = vmatprep.mubr.f32.mxu0 %v3442_v3  ;;  %184 = vmatprep.mubr.f32.mxu1 %v3442_v3  ;;  %v23_v5 = vld [vmem:[%s3428_s0] sm:$0xff]  ;;  %s1981_s17 = smov 113   ;;  %s1982_s18 = smov 16   ;;  %v191_v21 = vlaneseq  ;;  %v2178_v52 = vrot.slane %v3442_v3, 6  ;;  %v2200_v60 = vrot.slane %v3442_v3, 4 }
   0x2   :  { %v28_v1 = vld [vmem:[%s3428_s0 + $0x28] sm:$0x3]  ;;  %v27_v6 = vld [vmem:[%s3428_s0 + $0x20] sm:$0x3]  ;;  %v26_v7 = vld [vmem:[%s3428_s0 + $0x18] sm:$0xff]  ;;  %s1983_s19 = smov 15  }
   0x3   :  { %v1676_v4 = vpack.c.bf16 %v28_v1, %v24_v0  ;;  %v1679_v8 = vpack.c.bf16 %v27_v6, %v23_v5  ;;  %v30_v9 = vld [vmem:[%s3428_s0 + $0x38] sm:$0x3]  ;;  %v25_v10 = vld [vmem:[%s3428_s0 + $0x10] sm:$0xff]  ;;  %v31_v13 = vld [vmem:[%s3429_s1] sm:$0x3]  ;;  %s1979_s1 = smov 127  }
   0x4   :  { %v1682_v11 = vpack.c.bf16 %v30_v9, %v26_v7  ;;  %v29_v12 = vld [vmem:[%s3428_s0 + $0x30] sm:$0x3]  ;;  %s1984_s20 = smov 1   ;;  %s1985_s21 = smov 112   ;;  %v2125_v22 = vand.u32 127, %v191_v21  ;;  %3472 = vst [vmem:[#allocation7_spill] sm:$0xff] %v2200_v60 }
   0x5   :  { %1678 = vmatprep.subr.msk.bf16.mxu0 %vm2044_vm2, %v1676_v4  ;;  %v1685_v14 = vpack.c.bf16 %v29_v12, %v25_v10  ;;  %s1986_s22 = smov 34   ;;  %s1987_s23 = smov 126   ;;  %v2001_v61 = vmov 0   ;;  %v1577_v62 = vld [vmem:[%s3430_s3 + $0x8] sm:$0x3]  ;;  %v1576_v63 = vld [vmem:[%s3430_s3] sm:$0xff] }
   0x6   :  { %1681 = vmatpush1.bf16.msk.msra.mxu0 %vm2044_vm2, %v1679_v8  ;;  %1684 = vmatprep.subr.msk.bf16.mxu1 %vm2044_vm2, %v1682_v11  ;;  %s1988_s24 = smov 98   ;;  %s1989_s25 = smov 111   ;;  %v193_v23 = vadd.s32 128, %v2125_v22  ;;  %v194_v24 = vadd.s32 256, %v2125_v22  ;;  %v195_v25 = vadd.s32 384, %v2125_v22  ;;  %v2131_v26 = vand.u32 15, %v2125_v22 }
   0x7   :  { %1687 = vmatpush1.bf16.msk.msra.mxu1 %vm2044_vm2, %v1685_v14  ;;  %s1990_s26 = smov 32   ;;  %s1991_s27 = smov 30   ;;  %v2142_v31 = vand.u32 255, %v2125_v22  ;;  %vm332_vm5 = vcmp.lt.s32.totalorder %v2125_v22, 127  ;;  %vm212_vm6 = vcmp.lt.s32.totalorder %v2125_v22, 17  ;;  %vm357_vm1 = vcmp.lt.s32.totalorder %v2125_v22, 113  ;;  %1967 = vset.pattern.permute.xlu1 %v2001_v61 }
   0x8   :  { %s1992_s28 = smov 2   ;;  %s1993_s29 = smov 96   ;;  %v2133_v27 = vand.u32 15, %v193_v23  ;;  %v2135_v28 = vand.u32 15, %v194_v24  ;;  %v2137_v29 = vand.u32 15, %v195_v25  ;;  %v2144_v32 = vand.u32 255, %v194_v24  ;;  %1966 = vset.pattern.permute.xlu0 %v2001_v61 }
   0x9   :  { %1666 = vmatmul.mubr.msk.f32.vlgmr.msra.gmra.mrb[0].mxu0 %vm32_vm3, %v31_v13  ;;  %s1994_s30 = smov 68   ;;  %s1995_s7 = smov 124   ;;  %vm3436_vm4 = vcmp.lt.s32.totalorder %v2131_v26, 15  ;;  %vm221_vm11 = vcmp.ge.s32.totalorder %v2131_v26, 1  ;;  %v2155_v34 = vand.u32 255, %v193_v23  ;;  %v2157_v35 = vand.u32 255, %v195_v25 }
   0xa   :  { %1486 = vmatprep.mubr.f32.mxu0 %v3442_v3  ;;  %1669 = vmatmul.mubr.msk.f32.vlgmr.msra.gmra.mrb[0].mxu1 %vm32_vm3, %v31_v13  ;;  %s1996_s8 = smov 94   ;;  %s1997_s9 = smov 64   ;;  %vm3440_vm7 = vcmp.ge.s32.totalorder %v2133_v27, 1  ;;  %vm3437_vm8 = vcmp.lt.s32.totalorder %v2133_v27, 15  ;;  %vm3441_vm9 = vcmp.lt.s32.totalorder %v2135_v28, 15  ;;  %vm3444_vm10 = vcmp.lt.s32.totalorder %v2137_v29, 15 }
   0xb   :  { %1563 = vmatprep.mubr.f32.mxu1 %v3442_v3  ;;  %s1998_s10 = smov 60   ;;  %s1999_s11 = smov 4   ;;  %vm223_vm12 = vcmp.ge.s32.totalorder %v2135_v28, 1  ;;  %vm217_vm13 = vcmp.ge.s32.totalorder %v2142_v31, 16  ;;  %vm219_vm14 = vcmp.ge.s32.totalorder %v2144_v32, 16  ;;  %vm224_vm15 = vcmp.ge.s32.totalorder %v2137_v29, 1 }
   0xc   :  { %s2000_s12 = smov 8   ;;  %vm3439_vm2 = vcmp.lt.s32.totalorder %v2155_v34, 240  ;;  %vm3438_vm3 = vcmp.lt.s32.totalorder %v2157_v35, 240  ;;  %vm249_vm0 = vcmp.lt.s32.totalorder %v2125_v22, 16  ;;  %v2224_v6 = vrot.slane %v3442_v3, 2  ;;  %v1596_v12 = vld [vmem:[%s3431_s4] sm:$0xff] }
   0xd   :  { %v1597_v13 = vld [vmem:[%s3431_s4 + $0x8] sm:$0x3] }
   0xe   :  { %3475 = vst [vmem:[#allocation8_spill] sm:$0xff] %v2224_v6 }
  0xdc   :  { %v2081_v15 = vpop.f32.mrb[0].mxu0 }
  0xdd   :  { %3465 = vst [vmem:[#allocation2_spill] sm:$0xff] %v2081_v15  ;;  %910 = vrot.lane.b32.xlu0 %v2081_v15, %s1978_s15  ;;  %v2085_v16 = vpop.f32.mrb[1].mxu0  ;;  %v2087_v17 = vpop.f32.mrb[0].mxu1 }
  0xde   :  { %3466 = vst [vmem:[#allocation3_spill] sm:$0xff] %v2085_v16  ;;  %3467 = vst [vmem:[#allocation4_spill] sm:$0xff] %v2087_v17  ;;  %v2091_v18 = vpack.i.bf16 %v2085_v16, %v2081_v15  ;;  %v2093_v19 = vpop.f32.mrb[1].mxu1 }
  0xdf   :  { %3468 = vst [vmem:[#allocation5_spill] sm:$0xff] %v2093_v19  ;;  %v1761_v20 = vpack.i.bf16 %v2093_v19, %v2087_v17 }
  0xe0   :  { %1757 = vrot.lane.b32.xlu1 %v2091_v18, %s1979_s1 }
  0xe1   :  { %1747 = vrot.lane.b32.xlu0 %v2091_v18, %s1980_s16 }
  0xe4   :  { %1762 = vrot.lane.b32.xlu1 %v1761_v20, %s1979_s1 }
  0xe5   :  { %1752 = vrot.lane.b32.xlu0 %v1761_v20, %s1980_s16 }
  0xe8   :  { %1772 = vrot.lane.b32.xlu1 %v1761_v20, %s1981_s17 }
  0xe9   :  { %1767 = vrot.lane.b32.xlu0 %v2091_v18, %s1981_s17 }
  0xec   :  { %1782 = vrot.lane.b32.xlu1 %v1761_v20, %s1982_s18 }
  0xed   :  { %1777 = vrot.lane.b32.xlu0 %v2091_v18, %s1982_s18 }
  0xf0   :  { %1792 = vrot.lane.b32.xlu1 %v1761_v20, %s1983_s19 }
  0xf1   :  { %1787 = vrot.lane.b32.xlu0 %v2091_v18, %s1983_s19 }
  0xf4   :  { %1802 = vrot.lane.b32.xlu1 %v1761_v20, %s1984_s20 }
  0xf5   :  { %1797 = vrot.lane.b32.xlu0 %v2091_v18, %s1984_s20 }
  0xf8   :  { %1812 = vrot.lane.b32.xlu1 %v1761_v20, %s1985_s21 }
  0xf9   :  { %1807 = vrot.lane.b32.xlu0 %v2091_v18, %s1985_s21 }
  0xfc   :  { %1822 = vrot.lane.b32.xlu1 %v1761_v20, %s1986_s22 }
  0xfd   :  { %1817 = vrot.lane.b32.xlu0 %v2091_v18, %s1986_s22 }
 0x100   :  { %1832 = vrot.lane.b32.xlu1 %v1761_v20, %s1987_s23 }
 0x101   :  { %1827 = vrot.lane.b32.xlu0 %v2091_v18, %s1987_s23 }
 0x104   :  { %1842 = vrot.lane.b32.xlu1 %v1761_v20, %s1988_s24 }
 0x105   :  { %1837 = vrot.lane.b32.xlu0 %v2091_v18, %s1988_s24 }
 0x108   :  { %1852 = vrot.lane.b32.xlu1 %v1761_v20, %s1989_s25 }
 0x109   :  { %1847 = vrot.lane.b32.xlu0 %v2091_v18, %s1989_s25 }
 0x10c   :  { %1862 = vrot.lane.b32.xlu1 %v1761_v20, %s1990_s26 }
 0x10d   :  { %1857 = vrot.lane.b32.xlu0 %v2091_v18, %s1990_s26 }
 0x110   :  { %1872 = vrot.lane.b32.xlu1 %v1761_v20, %s1991_s27 }
 0x111   :  { %1867 = vrot.lane.b32.xlu0 %v2091_v18, %s1991_s27 }
 0x114   :  { %1882 = vrot.lane.b32.xlu1 %v1761_v20, %s1992_s28 }
 0x115   :  { %1877 = vrot.lane.b32.xlu0 %v2091_v18, %s1992_s28 }
 0x118   :  { %1892 = vrot.lane.b32.xlu1 %v1761_v20, %s1993_s29 }
 0x119   :  { %1887 = vrot.lane.b32.xlu0 %v2091_v18, %s1993_s29 }
 0x11c   :  { %1902 = vrot.lane.b32.xlu1 %v1761_v20, %s1994_s30 }
 0x11d   :  { %1897 = vrot.lane.b32.xlu0 %v2091_v18, %s1994_s30 }
 0x120   :  { %1912 = vrot.lane.b32.xlu1 %v1761_v20, %s1995_s7 }
 0x121   :  { %1907 = vrot.lane.b32.xlu0 %v2091_v18, %s1995_s7 }
 0x124   :  { %1922 = vrot.lane.b32.xlu1 %v1761_v20, %s1996_s8 }
 0x125   :  { %1917 = vrot.lane.b32.xlu0 %v2091_v18, %s1996_s8 }
 0x128   :  { %1932 = vrot.lane.b32.xlu1 %v1761_v20, %s1997_s9 }
 0x129   :  { %1927 = vrot.lane.b32.xlu0 %v2091_v18, %s1997_s9 }
 0x12c   :  { %1942 = vrot.lane.b32.xlu1 %v1761_v20, %s1998_s10 }
 0x12d   :  { %1937 = vrot.lane.b32.xlu0 %v2091_v18, %s1998_s10 }
 0x130   :  { %1952 = vrot.lane.b32.xlu1 %v1761_v20, %s1999_s11 }
 0x131   :  { %1947 = vrot.lane.b32.xlu0 %v2091_v18, %s1999_s11 }
 0x134   :  { %1962 = vrot.lane.b32.xlu1 %v1761_v20, %s2000_s12 }
 0x135   :  { %1957 = vrot.lane.b32.xlu0 %v2091_v18, %s2000_s12 }
 0x138   :  { %912 = vrot.lane.b32.xlu1 %v2085_v16, %s1978_s15 }
 0x139   :  { %914 = vrot.lane.b32.xlu0 %v2087_v17, %s1978_s15 }
 0x13c   :  { %916 = vrot.lane.b32.xlu1 %v2093_v19, %s1978_s15 }
 0x13d   :  { %1580 = vperm.xlu0 %1966, %v1576_v63  }
 0x140   :  { %1585 = vperm.xlu1 %1967, %v1577_v62  }
 0x141   :  { %1605 = vperm.xlu0 %1966, %v1597_v13  }
 0x144   :  { %1600 = vperm.xlu1 %1967, %v1596_v12  }
 0x14f   :  { %v2139_v30 = vpop.permute.xlu0 %910 }
 0x150   :  { %3469 = vst [vmem:[#allocation6_spill] sm:$0xff] %v2139_v30 }
 0x152   :  { %v1758_v33 = vpop.permute.xlu1 %1757 }
 0x153   :  { %v1760_v36 = vunpack.i.h.bf16 %v1758_v33  ;;  %v1759_v37 = vunpack.i.l.bf16 %v1758_v33  ;;  %v1748_v38 = vpop.permute.xlu0 %1747 }
 0x154   :  { %v1750_v39 = vunpack.i.h.bf16 %v1748_v38  ;;  %v1749_v40 = vunpack.i.l.bf16 %v1748_v38 }
 0x155   :  { %v335_v42 = vsel %vm332_vm5, %v1759_v37, %v1760_v36 }
 0x156   :  { %v215_v45 = vsel %vm212_vm6, %v1749_v40, %v1750_v39  ;;  %v1763_v46 = vpop.permute.xlu1 %1762  ;;  %v2175_v48 = vsel %vm3436_vm4, %v335_v42, 0.0  ;;  %vm2195_vm4 = vmand %vm219_vm14, %vm223_vm12 }
 0x157   :  { %v1765_v49 = vunpack.i.h.bf16 %v1763_v46  ;;  %v1764_v50 = vunpack.i.l.bf16 %v1763_v46  ;;  %v1753_v51 = vpop.permute.xlu0 %1752  ;;  %v2182_v53 = vsel %vm3440_vm7, %v215_v45, 0.0  ;;  %v1055_v0 = vrot.slane %v2175_v48, 6 }
 0x158   :  { %v1755_v54 = vunpack.i.h.bf16 %v1753_v51  ;;  %v1754_v55 = vunpack.i.l.bf16 %v1753_v51  ;;  %v1020_v7 = vrot.slane %v2182_v53, 6  ;;  %v1624_v53 = vld [vmem:[%s3432_s5] sm:$0xff] }
 0x159   :  { %v333_v56 = vsel %vm332_vm5, %v1764_v50, %v1765_v49  ;;  %v334_v57 = vsel %vm332_vm5, %v1760_v36, %v1764_v50  ;;  %v336_v58 = vsel %vm332_vm5, %v1765_v49, %v1759_v37  ;;  %vm2217_vm5 = vmand %vm217_vm13, %vm221_vm11  ;;  %1628 = vperm.xlu1 %1967, %v1624_v53  }
 0x15a   :  { %v2211_v1 = vsel %vm3437_vm8, %v334_v57, 0.0  ;;  %v213_v4 = vsel %vm212_vm6, %v1754_v55, %v1755_v54  ;;  %v1773_v5 = vpop.permute.xlu1 %1772  ;;  %v2229_v8 = vsel %vm3441_vm9, %v333_v56, 0.0  ;;  %v2233_v9 = vsel %vm3444_vm10, %v336_v58, 0.0 }
 0x15b   :  { %v214_v10 = vsel %vm212_vm6, %v1750_v39, %v1754_v55  ;;  %v1768_v11 = vpop.permute.xlu0 %1767  ;;  %vm274_vm8 = vcmp.lt.s32.totalorder %v2125_v22, 15  ;;  %v1056_v14 = vrot.slane %v2211_v1, 6  ;;  %v216_v18 = vsel %vm212_vm6, %v1755_v54, %v1749_v40  ;;  %vm2260_vm6 = vmand %vm3439_vm2, %vm3440_vm7  ;;  %v1625_v54 = vld [vmem:[%s3432_s5 + $0x8] sm:$0x3] }
 0x15c   :  { %v239_v20 = vsel %vm2195_vm4, %v214_v10, 0.0  ;;  %v1775_v21 = vunpack.i.h.bf16 %v1773_v5  ;;  %v237_v23 = vsel %vm2217_vm5, %v216_v18, 0.0  ;;  %v2253_v24 = vsel %vm224_vm15, %v213_v4, 0.0  ;;  %vm2282_vm4 = vmand %vm3438_vm3, %vm224_vm15  ;;  %1633 = vperm.xlu0 %1966, %v1625_v54  }
 0x15d   :  { %v1021_v25 = vrot.slane %v239_v20, 6  ;;  %v1774_v33 = vunpack.i.l.bf16 %v1773_v5  ;;  %v1057_v36 = vrot.slane %v2229_v8, 6  ;;  %v1019_v37 = vrot.slane %v237_v23, 6 }
 0x15e   :  { %v1770_v39 = vunpack.i.h.bf16 %v1768_v11  ;;  %v1769_v40 = vunpack.i.l.bf16 %v1768_v11  ;;  %v1783_v42 = vpop.permute.xlu1 %1782  ;;  %v1058_v45 = vrot.slane %v2233_v9, 6  ;;  %v1022_v55 = vrot.slane %v2253_v24, 6 }
 0x15f   :  { %v358_v46 = vsel %vm357_vm1, %v1774_v33, %v1775_v21  ;;  %v1785_v49 = vunpack.i.h.bf16 %v1783_v42  ;;  %v1784_v50 = vunpack.i.l.bf16 %v1783_v42  ;;  %v1778_v51 = vpop.permute.xlu0 %1777  ;;  %vm3480_vm5 = vcmask 1041408  }
 0x160   :  { %v2276_v56 = vsel %vm223_vm12, %v358_v46, 0.0  ;;  %v359_v58 = vsel %vm357_vm1, %v1770_v39, %v1774_v33  ;;  %v360_v59 = vsel %vm357_vm1, %v1769_v40, %v1770_v39  ;;  %v2292_v61 = vsel %vm3480_vm5, %v2087_v17, %v1021_v25  ;;  %vm3481_vm2 = vmmov %vm3480_vm5 }
 0x161   :  { %v379_v62 = vsel %vm2260_vm6, %v359_v58, 0.0  ;;  %v361_v63 = vsel %vm357_vm1, %v1775_v21, %v1769_v40  ;;  %vm307_vm3 = vcmp.lt.s32.totalorder %v2125_v22, 1  ;;  %v2301_v2 = vsel %vm3481_vm2, %v2085_v16, %v1020_v7  ;;  %vm3482_vm7 = vmmov %vm3481_vm2 }
 0x162   :  { %v2305_v4 = vsel %vm3482_vm7, %v2081_v15, %v1019_v37  ;;  %v2308_v10 = vrot.slane %v379_v62, 4  ;;  %v2312_v11 = vsel %vm221_vm11, %v360_v59, 0.0  ;;  %v1793_v12 = vpop.permute.xlu1 %1792  ;;  %v381_v13 = vsel %vm2282_vm4, %v361_v63, 0.0  ;;  %vm2332_vm2 = vmand %vm219_vm14, %vm3441_vm9 }
 0x163   :  { %v2318_v7 = vsel %vm249_vm0, %v1784_v50, %v1785_v49  ;;  %v1780_v18 = vunpack.i.h.bf16 %v1778_v51  ;;  %v1779_v20 = vunpack.i.l.bf16 %v1778_v51  ;;  %v1788_v21 = vpop.permute.xlu0 %1787  ;;  %vm390_vm7 = vcmp.lt.s32.totalorder %v2125_v22, 112 }
 0x164   :  { %vm3447_vm1 = vcmask 1043456   ;;  %v1795_v23 = vunpack.i.h.bf16 %v1793_v12  ;;  %v1794_v24 = vunpack.i.l.bf16 %v1793_v12  ;;  %v1790_v25 = vunpack.i.h.bf16 %v1788_v21 }
 0x165   :  { %v1789_v33 = vunpack.i.l.bf16 %v1788_v21  ;;  %v1067_v37 = vrot.slane %v2312_v11, 4  ;;  %v251_v38 = vsel %vm249_vm0, %v1780_v18, %v1784_v50  ;;  %v252_v39 = vsel %vm249_vm0, %v1779_v20, %v1780_v18 }
 0x166   :  { %v253_v40 = vsel %vm249_vm0, %v1785_v49, %v1779_v20  ;;  %v2336_v46 = vrot.slane %v381_v13, 4  ;;  %v2340_v51 = vsel %vm219_vm14, %v251_v38, 0.0  ;;  %v275_v49 = vsel %vm274_vm8, %v1794_v24, %v1795_v23  ;;  %v1803_v53 = vpop.permute.xlu1 %1802 }
 0x167   :  { %v2344_v50 = vsel %vm217_vm13, %v253_v40, 0.0  ;;  %vm455_vm6 = vcmp.ge.s32.totalorder %v2135_v28, 2  ;;  %v1034_v54 = vrot.slane %v2318_v7, 4  ;;  %v2353_v57 = vsel %vm3444_vm10, %v275_v49, 0.0  ;;  %v1798_v62 = vpop.permute.xlu0 %1797 }
 0x168   :  { %vm3485_vm14 = vcmp.lt.s32.totalorder %v2131_v26, 15  ;;  %v276_v59 = vsel %vm274_vm8, %v1790_v25, %v1794_v24  ;;  %vm449_vm5 = vcmp.ge.s32.totalorder %v2142_v31, 32  ;;  %vm3451_vm9 = vcmp.ge.s32.totalorder %v2131_v26, 2 }
 0x169   :  { %vm2359_vm4 = vmand %vm217_vm13, %vm3485_vm14  ;;  %vm3488_vm0 = vcmask 1041408   ;;  %v1032_v12 = vrot.slane %v252_v39, 4  ;;  %v297_v13 = vsel %vm2332_vm2, %v276_v59, 0.0  ;;  %v277_v18 = vsel %vm274_vm8, %v1789_v33, %v1790_v25 }
 0x16a   :  { %v2369_v63 = vsel %vm3488_vm0, %v2093_v19, %v1022_v55  ;;  %v278_v20 = vsel %vm274_vm8, %v1795_v23, %v1789_v33  ;;  %vm444_vm13 = vcmp.lt.s32.totalorder %v2125_v22, 34  ;;  %v1031_v24 = vrot.slane %v2344_v50, 4  ;;  %v1813_v49 = vpop.permute.xlu1 %1812 }
 0x16b   :  { %v1046_v38 = vrot.slane %v2353_v57, 2  ;;  %v1805_v55 = vunpack.i.h.bf16 %v1803_v53  ;;  %vm456_vm0 = vcmp.ge.s32.totalorder %v2137_v29, 2  ;;  %v2382_v39 = vrot.slane %v297_v13, 2  ;;  %v1808_v47 = vpop.permute.xlu0 %1807 }
 0x16c   :  { %v295_v40 = vsel %vm2359_vm4, %v278_v20, 0.0  ;;  %v1804_v25 = vunpack.i.l.bf16 %v1803_v53  ;;  %v1800_v42 = vunpack.i.h.bf16 %v1798_v62  ;;  %vm3449_vm8 = vcmp.ge.s32.totalorder %v2133_v27, 2 }
 0x16d   :  { %vm3489_vm2 = vcmp.lt.s32.totalorder %v2133_v27, 15  ;;  %v1799_v33 = vunpack.i.l.bf16 %v1798_v62  ;;  %v1815_v59 = vunpack.i.h.bf16 %v1813_v49  ;;  %v1814_v3 = vunpack.i.l.bf16 %v1813_v49 }
 0x16e   :  { %v2389_v23 = vsel %vm3489_vm2, %v277_v18, 0.0  ;;  %vm564_vm14 = vcmp.lt.s32.totalorder %v2125_v22, 126  ;;  %vm3446_vm10 = vcmask 1045504   ;;  %v308_v58 = vsel %vm307_vm3, %v1804_v25, %v1805_v55 }
 0x16f   :  { %v309_v53 = vsel %vm307_vm3, %v1800_v42, %v1804_v25  ;;  %v1810_v13 = vunpack.i.h.bf16 %v1808_v47  ;;  %v1809_v20 = vunpack.i.l.bf16 %v1808_v47  ;;  %vm3453_vm4 = vcmp.lt.s32.totalorder %v2135_v28, 14 }
 0x170   :  { %v2397_v44 = vrot.slane %v295_v40, 2  ;;  %v322_v62 = vsel %vm223_vm12, %v309_v53, 0.0  ;;  %v310_v18 = vsel %vm307_vm3, %v1799_v33, %v1800_v42  ;;  %v311_v49 = vsel %vm307_vm3, %v1805_v55, %v1799_v33  ;;  %v1823_v40 = vpop.permute.xlu1 %1822 }
 0x171   :  { %v1044_v43 = vrot.slane %v2389_v23, 2  ;;  %v320_v25 = vsel %vm221_vm11, %v311_v49, 0.0  ;;  %v2410_v47 = vsel %vm390_vm7, %v1814_v3, %v1815_v59  ;;  %v1165_v53 = vsel %vm3447_vm1, %v2301_v2, %v1032_v12  ;;  %v1818_v49 = vpop.permute.xlu0 %1817 }
 0x172   :  { %v323_v42 = vsel %vm224_vm15, %v308_v58, 0.0  ;;  %vm3490_vm12 = vcmask 1041408   ;;  %vm3491_vm11 = vcmp.ge.s32.totalorder %v2133_v27, 1  ;;  %v392_v33 = vsel %vm390_vm7, %v1810_v13, %v1814_v3 }
 0x173   :  { %v2420_v55 = vsel %vm3490_vm12, %v322_v62, %v1057_v36  ;;  %v321_v23 = vsel %vm3491_vm11, %v310_v18, 0.0  ;;  %vm3492_vm3 = vmmov %vm3490_vm12  ;;  %vm3493_vm2 = vcmp.lt.s32.totalorder %v2155_v34, 240  ;;  %v394_v8 = vsel %vm390_vm7, %v1815_v59, %v1809_v20 }
 0x174   :  { %v2429_v41 = vsel %vm3492_vm3, %v320_v25, %v1055_v0  ;;  %v404_v2 = vsel %vm3493_vm2, %v392_v33, 0.0  ;;  %v1825_v36 = vunpack.i.h.bf16 %v1823_v40  ;;  %vm3452_vm15 = vcmp.lt.s32.totalorder %v2131_v26, 14  ;;  %v1833_v18 = vpop.permute.xlu1 %1832 }
 0x175   :  { %v2439_v3 = vsel %vm390_vm7, %v1809_v20, %v1810_v13  ;;  %v1824_v58 = vunpack.i.l.bf16 %v1823_v40  ;;  %vm3494_vm12 = vcmp.ge.s32.totalorder %v2144_v32, 32  ;;  %v1820_v0 = vunpack.i.h.bf16 %v1818_v49  ;;  %vm2455_vm7 = vmand %vm449_vm5, %vm3451_vm9  ;;  %v1828_v12 = vpop.permute.xlu0 %1827 }
 0x176   :  { %vm2445_vm11 = vmand %vm3494_vm12, %vm455_vm6  ;;  %v1080_v59 = vrot.slane %v404_v2, 2  ;;  %vm3497_vm2 = vcmp.lt.s32.totalorder %v2157_v35, 240  ;;  %v1819_v20 = vunpack.i.l.bf16 %v1818_v49  ;;  %vm3445_vm3 = vcmp.lt.s32.totalorder %v2137_v29, 14 }
 0x177   :  { %v406_v62 = vsel %vm3497_vm2, %v394_v8, 0.0  ;;  %vm3500_vm12 = vcmask 1041408   ;;  %v445_v40 = vsel %vm444_vm13, %v1824_v58, %v1825_v36  ;;  %v446_v33 = vsel %vm444_vm13, %v1820_v0, %v1824_v58 }
 0x178   :  { %v1174_v25 = vsel %vm3500_vm12, %v321_v23, %v1056_v14  ;;  %v1835_v2 = vunpack.i.h.bf16 %v1833_v18  ;;  %v1834_v8 = vunpack.i.l.bf16 %v1833_v18  ;;  %vm589_vm2 = vcmp.lt.s32.totalorder %v2125_v22, 98 }
 0x179   :  { %v2470_v49 = vsel %vm456_vm0, %v445_v40, 0.0  ;;  %v471_v1 = vsel %vm2445_vm11, %v446_v33, 0.0  ;;  %v447_v14 = vsel %vm444_vm13, %v1819_v20, %v1820_v0  ;;  %v448_v23 = vsel %vm444_vm13, %v1825_v36, %v1819_v20  ;;  %v1843_v33 = vpop.permute.xlu1 %1842 }
 0x17a   :  { %vm3450_vm12 = vcmp.lt.s32.totalorder %v2155_v34, 224  ;;  %v1079_v58 = vrot.slane %v2439_v3, 2  ;;  %v1082_v18 = vrot.slane %v406_v62, 2  ;;  %v469_v5 = vsel %vm2455_vm7, %v448_v23, 0.0  ;;  %v1838_v23 = vpop.permute.xlu0 %1837 }
 0x17b   :  { %v2484_v40 = vsel %vm3449_vm8, %v447_v14, 0.0  ;;  %vm3448_vm11 = vcmp.lt.s32.totalorder %v2157_v35, 224  ;;  %v565_v0 = vsel %vm564_vm14, %v1834_v8, %v1835_v2  ;;  %v1830_v36 = vunpack.i.h.bf16 %v1828_v12 }
 0x17c   :  { %v1170_v20 = vsel %vm3446_vm10, %v1165_v53, %v1044_v43  ;;  %v2491_v3 = vrot.slane %v471_v1, 6  ;;  %v2495_v62 = vsel %vm3453_vm4, %v565_v0, 0.0  ;;  %v1829_v13 = vunpack.i.l.bf16 %v1828_v12 }
 0x17d   :  { %v1178_v14 = vsel %vm3447_vm1, %v1174_v25, %v2308_v10  ;;  %vm415_vm13 = vcmp.lt.s32.totalorder %v2125_v22, 111  ;;  %v2500_v48 = vrot.slane %v469_v5, 6  ;;  %v566_v43 = vsel %vm564_vm14, %v1830_v36, %v1834_v8 }
 0x17e   :  { %v1182_v53 = vsel %vm3446_vm10, %v1178_v14, %v1080_v59  ;;  %vm3501_vm7 = vcmp.lt.s32.totalorder %v2133_v27, 14  ;;  %v567_v12 = vsel %vm564_vm14, %v1829_v13, %v1830_v36  ;;  %v1167_v5 = vsel %vm3447_vm1, %v2369_v63, %v1034_v54  ;;  %v2525_v36 = vpop.permute.xlu1 %1852  ;;  %v1848_v57 = vpop.permute.xlu0 %1847 }
 0x17f   :  { %v2508_v1 = vsel %vm3501_vm7, %v566_v43, 0.0  ;;  %v1688_v10 = vpack.c.bf16 %v1182_v53, %v1170_v20  ;;  %v1129_v25 = vrot.slane %v2495_v62, 6  ;;  %v568_v8 = vsel %vm564_vm14, %v1835_v2, %v1829_v13 }
 0x180   :  { %v1172_v59 = vsel %vm3446_vm10, %v1167_v5, %v1046_v38  ;;  %vm3502_vm7 = vcmask 1041408   ;;  %v2530_v54 = vsel %vm3452_vm15, %v567_v12, 0.0  ;;  %v1845_v2 = vunpack.i.h.bf16 %v1843_v33 }
 0x181   :  { %v1176_v0 = vsel %vm3502_vm7, %v323_v42, %v1058_v45  ;;  %1689 = vmatprep.subr.bf16.mxu0 %v1688_v10  ;;  %v1844_v20 = vunpack.i.l.bf16 %v1843_v33  ;;  %v1164_v9 = vsel %vm3447_vm1, %v2305_v4, %v1031_v24  ;;  %v1177_v45 = vsel %vm3447_vm1, %v2429_v41, %v1067_v37 }
 0x182   :  { %v1180_v63 = vsel %vm3447_vm1, %v1176_v0, %v2336_v46  ;;  %vm481_vm14 = vcmp.lt.s32.totalorder %v2125_v22, 32  ;;  %v2546_v46 = vsel %vm3445_vm3, %v568_v8, 0.0  ;;  %v1181_v50 = vsel %vm3446_vm10, %v1177_v45, %v1079_v58  ;;  %v1863_v13 = vpop.permute.xlu1 %1862  ;;  %vm2571_vm3 = vmand %vm3450_vm12, %vm3449_vm8 }
 0x183   :  { %v1184_v38 = vsel %vm3446_vm10, %v1180_v63, %v1082_v18  ;;  %v1169_v18 = vsel %vm3446_vm10, %v1164_v9, %v2397_v44  ;;  %v590_v4 = vsel %vm589_vm2, %v1844_v20, %v1845_v2  ;;  %v3503_v11 = vrot.slane %v2340_v51, 4 }
 0x184   :  { %v1704_v42 = vpack.c.bf16 %v1184_v38, %v1172_v59  ;;  %v1690_v24 = vpack.c.bf16 %v1181_v50, %v1169_v18  ;;  %v3504_v37 = vrot.slane %v2276_v56, 4  ;;  %vm506_vm7 = vcmp.lt.s32.totalorder %v2125_v22, 30 }
 0x185   :  { %v1166_v41 = vsel %vm3447_vm1, %v2292_v61, %v3503_v11  ;;  %v3505_v58 = vrot.slane %v2410_v47, 2  ;;  %v1840_v61 = vunpack.i.h.bf16 %v1838_v23  ;;  %v1839_v51 = vunpack.i.l.bf16 %v1838_v23 }
 0x186   :  { %v1179_v33 = vsel %vm3447_vm1, %v2420_v55, %v3504_v37  ;;  %1705 = vmatprep.subr.bf16.mxu1 %v1704_v42  ;;  %v1171_v44 = vsel %vm3446_vm10, %v1166_v41, %v2382_v39  ;;  %v1858_v55 = vpop.permute.xlu0 %1857  ;;  %v2577_v43 = vsel %vm455_vm6, %v590_v4, 0.0  ;;  %1691 = vmatpush1.bf16.msra.mxu0 %v1690_v24  ;;  %v1855_v53 = vunpack.i.h.bf16 %v2525_v36  ;;  %v1873_v38 = vpop.permute.xlu1 %1872 }
 0x187   :  { %v1183_v14 = vsel %vm3446_vm10, %v1179_v33, %v3505_v58  ;;  %vm2583_vm10 = vmand %vm3448_vm11, %vm456_vm0  ;;  %v1854_v12 = vunpack.i.l.bf16 %v2525_v36  ;;  %v591_v23 = vsel %vm589_vm2, %v1840_v61, %v1844_v20  ;;  %v592_v10 = vsel %vm589_vm2, %v1839_v51, %v1840_v61 }
 0x188   :  { %v1706_v39 = vpack.c.bf16 %v1183_v14, %v1171_v44  ;;  %v593_v5 = vsel %vm589_vm2, %v1845_v2, %v1839_v51  ;;  %v1850_v8 = vunpack.i.h.bf16 %v1848_v57  ;;  %v1127_v59 = vrot.slane %v2530_v54, 6 }
 0x189   :  { %v611_v0 = vsel %vm2571_vm3, %v591_v23, 0.0  ;;  %v2600_v63 = vsel %vm3451_vm9, %v592_v10, 0.0  ;;  %v416_v36 = vsel %vm415_vm13, %v1854_v12, %v1855_v53  ;;  %v613_v45 = vsel %vm2583_vm10, %v593_v5, 0.0 }
 0x18a   :  { %1707 = vmatpush1.bf16.msra.mxu1 %v1706_v39  ;;  %v2606_v2 = vrot.slane %v611_v0, 4  ;;  %v1868_v42 = vpop.permute.xlu0 %1867  ;;  %vm539_vm3 = vcmp.lt.s32.totalorder %v2125_v22, 2  ;;  %vm3510_vm2 = vcmp.lt.s32.totalorder %v2135_v28, 15  ;;  %vm3511_vm1 = vcmp.lt.s32.totalorder %v2133_v27, 15  ;;  %v2640_v51 = vpop.permute.xlu1 %1882 }
 0x18b   :  { %v434_v50 = vsel %vm3510_vm2, %v416_v36, 0.0  ;;  %vm3512_vm11 = vcmp.lt.s32.totalorder %v2155_v34, 240  ;;  %v1849_v24 = vunpack.i.l.bf16 %v1848_v57  ;;  %v1865_v11 = vunpack.i.h.bf16 %v1863_v13 }
 0x18c   :  { %vm2618_vm8 = vmand %vm3512_vm11, %vm3511_vm1  ;;  %vm3515_vm10 = vcmp.lt.s32.totalorder %v2137_v29, 15  ;;  %vm3516_vm12 = vcmp.lt.s32.totalorder %v2157_v35, 240  ;;  %v2632_v37 = vsel %vm415_vm13, %v1850_v8, %v1854_v12  ;;  %v1864_v33 = vunpack.i.l.bf16 %v1863_v13 }
 0x18d   :  { %vm2626_vm9 = vmand %vm3516_vm12, %vm3515_vm10  ;;  %v1860_v44 = vunpack.i.h.bf16 %v1858_v55  ;;  %v1859_v58 = vunpack.i.l.bf16 %v1858_v55  ;;  %v418_v14 = vsel %vm415_vm13, %v1849_v24, %v1850_v8  ;;  %v2638_v57 = vsel %vm415_vm13, %v1855_v53, %v1849_v24 }
 0x18e   :  { %v1875_v56 = vunpack.i.h.bf16 %v1873_v38  ;;  %v1874_v61 = vunpack.i.l.bf16 %v1873_v38  ;;  %vm622_vm1 = vcmp.lt.s32.totalorder %v2125_v22, 96  ;;  %v2643_v39 = vrot.slane %v613_v45, 4  ;;  %v1878_v53 = vpop.permute.xlu0 %1877  ;;  %vm2680_vm10 = vmand %vm449_vm5, %vm3452_vm15 }
 0x18f   :  { %vm3519_vm12 = vcmp.lt.s32.totalorder %v2131_v26, 15  ;;  %v2649_v55 = vsel %vm481_vm14, %v1864_v33, %v1865_v11  ;;  %v483_v47 = vsel %vm481_vm14, %v1860_v44, %v1864_v33  ;;  %vm3520_vm11 = vcmask 1041408   ;;  %v1893_v33 = vpop.permute.xlu1 %1892 }
 0x190   :  { %v432_v13 = vsel %vm3519_vm12, %v418_v14, 0.0  ;;  %v2655_v12 = vsel %vm3520_vm11, %v434_v50, %v2491_v3  ;;  %vm3521_vm13 = vcmp.ge.s32.totalorder %v2144_v32, 32  ;;  %vm3522_vm2 = vmmov %vm3520_vm11  ;;  %v485_v3 = vsel %vm481_vm14, %v1865_v11, %v1859_v58 }
 0x191   :  { %v2665_v5 = vsel %vm3521_vm13, %v483_v47, 0.0  ;;  %v2669_v8 = vsel %vm3522_vm2, %v432_v13, %v2500_v48  ;;  %v507_v36 = vsel %vm506_vm7, %v1874_v61, %v1875_v56  ;;  %vm687_vm12 = vcmp.ge.s32.totalorder %v2135_v28, 4  ;;  %vm2698_vm2 = vmand %vm3521_vm13, %vm3453_vm4 }
 0x192   :  { %v2688_v48 = vsel %vm481_vm14, %v1859_v58, %v1860_v44  ;;  %v2692_v45 = vsel %vm449_vm5, %v485_v3, 0.0  ;;  %v1870_v24 = vunpack.i.h.bf16 %v1868_v42  ;;  %v1869_v11 = vunpack.i.l.bf16 %v1868_v42  ;;  %v1888_v47 = vpop.permute.xlu0 %1887 }
 0x193   :  { %vm3461_vm15 = vcmp.ge.s32.totalorder %v2133_v27, 4  ;;  %vm3527_vm5 = vcmp.lt.s32.totalorder %v2137_v29, 14  ;;  %v1885_v14 = vunpack.i.h.bf16 %v2640_v51  ;;  %v1884_v13 = vunpack.i.l.bf16 %v2640_v51  ;;  %v1903_v51 = vpop.permute.xlu1 %1902 }
 0x194   :  { %v2707_v58 = vsel %vm3527_vm5, %v507_v36, 0.0  ;;  %vm676_vm13 = vcmp.lt.s32.totalorder %v2125_v22, 68  ;;  %vm681_vm4 = vcmp.ge.s32.totalorder %v2142_v31, 64  ;;  %vm685_vm11 = vcmp.ge.s32.totalorder %v2131_v26, 4 }
 0x195   :  { %v508_v42 = vsel %vm506_vm7, %v1870_v24, %v1874_v61  ;;  %v509_v3 = vsel %vm506_vm7, %v1869_v11, %v1870_v24  ;;  %v510_v36 = vsel %vm506_vm7, %v1875_v56, %v1869_v11  ;;  %v1880_v9 = vunpack.i.h.bf16 %v1878_v53 }
 0x196   :  { %vm688_vm5 = vcmp.ge.s32.totalorder %v2137_v29, 4  ;;  %vm3462_vm14 = vcmp.lt.s32.totalorder %v2157_v35, 192  ;;  %v529_v18 = vsel %vm2698_vm2, %v508_v42, 0.0  ;;  %v527_v61 = vsel %vm2680_vm10, %v510_v36, 0.0  ;;  %v1898_v38 = vpop.permute.xlu0 %1897 }
 0x197   :  { %v2729_v0 = vrot.slane %v529_v18, 2  ;;  %vm3528_vm7 = vcmp.lt.s32.totalorder %v2133_v27, 14  ;;  %v540_v11 = vsel %vm539_vm3, %v1884_v13, %v1885_v14  ;;  %v541_v20 = vsel %vm539_vm3, %v1880_v9, %v1884_v13 }
 0x198   :  { %v2733_v56 = vsel %vm3528_vm7, %v509_v3, 0.0  ;;  %v1879_v50 = vunpack.i.l.bf16 %v1878_v53  ;;  %v1895_v42 = vunpack.i.h.bf16 %v1893_v33  ;;  %v1894_v10 = vunpack.i.l.bf16 %v1893_v33 }
 0x199   :  { %v2739_v36 = vrot.slane %v527_v61, 2  ;;  %v554_v18 = vsel %vm455_vm6, %v541_v20, 0.0  ;;  %v1890_v24 = vunpack.i.h.bf16 %v1888_v47  ;;  %v1889_v7 = vunpack.i.l.bf16 %v1888_v47  ;;  %v1913_v61 = vpop.permute.xlu1 %1912 }
 0x19a   :  { %vm796_vm10 = vcmp.lt.s32.totalorder %v2125_v22, 124  ;;  %v542_v44 = vsel %vm539_vm3, %v1879_v50, %v1880_v9  ;;  %v543_v53 = vsel %vm539_vm3, %v1885_v14, %v1879_v50  ;;  %v2751_v33 = vsel %vm622_vm1, %v1894_v10, %v1895_v42  ;;  %v1908_v62 = vpop.permute.xlu0 %1907 }
 0x19b   :  { %v2756_v20 = vsel %vm456_vm0, %v540_v11, 0.0  ;;  %vm3529_vm6 = vcmp.ge.s32.totalorder %v2131_v26, 2  ;;  %v624_v47 = vsel %vm622_vm1, %v1890_v24, %v1894_v10  ;;  %v1905_v9 = vunpack.i.h.bf16 %v1903_v51 }
 0x19c   :  { %v552_v13 = vsel %vm3529_vm6, %v543_v53, 0.0  ;;  %vm3530_vm3 = vcmask 1041408   ;;  %vm3531_vm7 = vcmp.lt.s32.totalorder %v2155_v34, 224  ;;  %v2773_v11 = vsel %vm622_vm1, %v1889_v7, %v1890_v24 }
 0x19d   :  { %v2765_v14 = vsel %vm3530_vm3, %v554_v18, %v1129_v25  ;;  %v2769_v50 = vsel %vm3531_vm7, %v624_v47, 0.0  ;;  %v626_v53 = vsel %vm622_vm1, %v1895_v42, %v1889_v7  ;;  %vm744_vm6 = vcmp.lt.s32.totalorder %v2133_v27, 12  ;;  %v2818_v3 = vpop.permute.xlu1 %1922 }
 0x19e   :  { %vm3532_vm3 = vcmp.ge.s32.totalorder %v2133_v27, 2  ;;  %vm3533_vm7 = vcmask 1041408   ;;  %v1904_v18 = vunpack.i.l.bf16 %v1903_v51  ;;  %vm3534_vm1 = vcmp.ge.s32.totalorder %v2144_v32, 64  ;;  %v2840_v19 = vpop.permute.xlu0 %1917 }
 0x19f   :  { %v553_v25 = vsel %vm3532_vm3, %v542_v44, 0.0  ;;  %v2785_v10 = vsel %vm3533_vm7, %v552_v13, %v1127_v59  ;;  %vm2792_vm0 = vmand %vm3534_vm1, %vm687_vm12  ;;  %v1152_v42 = vrot.slane %v2769_v50, 2  ;;  %vm3537_vm3 = vcmp.lt.s32.totalorder %v2157_v35, 224 }
 0x1a0   :  { %v638_v44 = vsel %vm3537_vm3, %v626_v53, 0.0  ;;  %vm3538_vm7 = vcmp.lt.s32.totalorder %v2155_v34, 192  ;;  %v1900_v59 = vunpack.i.h.bf16 %v1898_v38  ;;  %v1899_v51 = vunpack.i.l.bf16 %v1898_v38  ;;  %vm2814_vm1 = vmand %vm681_vm4, %vm685_vm11 }
 0x1a1   :  { %vm2803_vm2 = vmand %vm3538_vm7, %vm3461_vm15  ;;  %v677_v47 = vsel %vm676_vm13, %v1904_v18, %v1905_v9  ;;  %v1915_v53 = vunpack.i.h.bf16 %v1913_v61  ;;  %v1914_v24 = vunpack.i.l.bf16 %v1913_v61  ;;  %v1910_v6 = vunpack.i.h.bf16 %v1908_v62 }
 0x1a2   :  { %v2822_v38 = vsel %vm688_vm5, %v677_v47, 0.0  ;;  %v2826_v13 = vsel %vm687_vm12, %v677_v47, 0.0  ;;  %vm2832_vm3 = vmand %vm3462_vm14, %vm688_vm5  ;;  %v678_v61 = vsel %vm676_vm13, %v1900_v59, %v1904_v18  ;;  %v679_v21 = vsel %vm676_vm13, %v1899_v51, %v1900_v59  ;;  %v2888_v15 = vpop.permute.xlu0 %1927 }
 0x1a3   :  { %v703_v47 = vsel %vm2792_vm0, %v678_v61, 0.0  ;;  %v830_v17 = vsel %vm2803_vm2, %v678_v61, 0.0  ;;  %v1909_v16 = vunpack.i.l.bf16 %v1908_v62  ;;  %v1154_v60 = vrot.slane %v638_v44, 2 }
 0x1a4   :  { %v680_v30 = vsel %vm676_vm13, %v1905_v9, %v1899_v51  ;;  %v2851_v18 = vsel %vm3461_vm15, %v679_v21, 0.0  ;;  %vm647_vm7 = vcmp.lt.s32.totalorder %v2125_v22, 94  ;;  %v2859_v62 = vsel %vm685_vm11, %v679_v21, 0.0 }
 0x1a5   :  { %v701_v54 = vsel %vm2814_vm1, %v680_v30, 0.0  ;;  %v832_v44 = vsel %vm2832_vm3, %v680_v30, 0.0  ;;  %v2863_v59 = vrot.slane %v703_v47, 6  ;;  %v2865_v9 = vrot.slane %v830_v17, 4  ;;  %v2880_v17 = vpop.permute.xlu1 %1932 }
 0x1a6   :  { %v797_v61 = vsel %vm796_vm10, %v1914_v24, %v1915_v53  ;;  %vm3545_vm13 = vcmp.lt.s32.totalorder %v2135_v28, 12  ;;  %v798_v21 = vsel %vm796_vm10, %v1910_v6, %v1914_v24  ;;  %v799_v23 = vsel %vm796_vm10, %v1909_v16, %v1910_v6 }
 0x1a7   :  { %v2872_v50 = vsel %vm3545_vm13, %v797_v61, 0.0  ;;  %v800_v30 = vsel %vm796_vm10, %v1915_v53, %v1909_v16  ;;  %v2882_v47 = vrot.slane %v701_v54, 6  ;;  %v2885_v51 = vrot.slane %v832_v44, 4 }
 0x1a8   :  { %v2892_v24 = vsel %vm744_vm6, %v798_v21, 0.0  ;;  %vm3546_vm2 = vcmp.lt.s32.totalorder %v2131_v26, 12  ;;  %vm3547_vm10 = vcmp.lt.s32.totalorder %v2137_v29, 12  ;;  %v3548_v53 = vrot.slane %v2484_v40, 6 }
 0x1a9   :  { %v2896_v6 = vsel %vm3546_vm2, %v799_v23, 0.0  ;;  %v2900_v16 = vsel %vm3547_vm10, %v800_v30, 0.0  ;;  %v3549_v54 = vsel %vm2618_vm8, %v2632_v37, 0.0  ;;  %vm3550_vm0 = vcmask 1041408  }
 0x1aa   :  { %v1186_v44 = vsel %vm3550_vm0, %v3549_v54, %v3548_v53  ;;  %vm713_vm1 = vcmp.lt.s32.totalorder %v2125_v22, 64  ;;  %v3551_v21 = vrot.slane %v2688_v48, 4  ;;  %vm3552_vm3 = vcmask 1043456   ;;  %vm3554_vm13 = vmmov %vm3550_vm0 }
 0x1ab   :  { %v3553_v23 = vrot.slane %v2508_v1, 6  ;;  %v3555_v30 = vrot.slane %v2470_v49, 6  ;;  %v3556_v40 = vsel %vm2626_vm9, %v2638_v57, 0.0  ;;  %vm3557_vm2 = vmmov %vm3550_vm0  ;;  %v3558_v37 = vrot.slane %v2546_v46, 6 }
 0x1ac   :  { %v1190_v7 = vsel %vm3552_vm3, %v1186_v44, %v3551_v21  ;;  %vm3559_vm8 = vmmov %vm3550_vm0  ;;  %v3560_v48 = vrot.slane %v2733_v56, 2  ;;  %vm3561_vm10 = vcmask 1045504   ;;  %v3563_v49 = vrot.slane %v2649_v55, 4 }
 0x1ad   :  { %v1198_v61 = vsel %vm3554_vm13, %v553_v25, %v3553_v23  ;;  %v1188_v4 = vsel %vm3557_vm2, %v3556_v40, %v3555_v30  ;;  %v1200_v53 = vsel %vm3559_vm8, %v2756_v20, %v3558_v37  ;;  %vm3562_vm0 = vmmov %vm3552_vm3  ;;  %v3567_v46 = vrot.slane %v2707_v58, 2 }
 0x1ae   :  { %v1194_v54 = vsel %vm3561_vm10, %v1190_v7, %v3560_v48  ;;  %v1202_v1 = vsel %vm3562_vm0, %v1198_v61, %v2606_v2  ;;  %vm3564_vm3 = vmmov %vm3562_vm0  ;;  %v1925_v7 = vunpack.i.h.bf16 %v2818_v3  ;;  %v1924_v2 = vunpack.i.l.bf16 %v2818_v3 }
 0x1af   :  { %v1192_v41 = vsel %vm3564_vm3, %v1188_v4, %v3563_v49  ;;  %vm3565_vm9 = vmmov %vm3562_vm0  ;;  %v3570_v55 = vrot.slane %v2692_v45, 4  ;;  %v3574_v3 = vrot.slane %v2665_v5, 4  ;;  %v3576_v40 = vrot.slane %v2773_v11, 2 }
 0x1b0   :  { %v1204_v57 = vsel %vm3565_vm9, %v1200_v53, %v2643_v39  ;;  %vm3566_vm13 = vmmov %vm3561_vm10  ;;  %v2949_v39 = vpop.permute.xlu1 %1942  ;;  %v648_v30 = vsel %vm647_vm7, %v1924_v2, %v1925_v7  ;;  %v1920_v5 = vunpack.i.h.bf16 %v2840_v19  ;;  %v3580_v37 = vrot.slane %v2751_v33, 2 }
 0x1b1   :  { %v1206_v25 = vsel %vm3566_vm13, %v1202_v1, %v1152_v42  ;;  %vm3568_vm2 = vmmov %vm3561_vm10  ;;  %v3573_v42 = vrot.slane %v2600_v63, 4  ;;  %v3577_v63 = vrot.slane %v2577_v43, 4  ;;  %v1919_v48 = vunpack.i.l.bf16 %v2840_v19 }
 0x1b2   :  { %v1196_v20 = vsel %vm3568_vm2, %v1192_v41, %v3567_v46  ;;  %vm3569_vm8 = vmmov %vm3568_vm2  ;;  %v1692_v44 = vpack.c.bf16 %v1206_v25, %v1194_v54  ;;  %v1249_v11 = vrot.slane %v2896_v6, 6  ;;  %v3002_v33 = vsel %vm647_vm7, %v1920_v5, %v1924_v2 }
 0x1b3   :  { %v1208_v56 = vsel %vm3569_vm8, %v1204_v57, %v1154_v60  ;;  %vm3571_vm10 = vmmov %vm3562_vm0  ;;  %vm738_vm0 = vcmp.lt.s32.totalorder %v2125_v22, 60  ;;  %v1201_v23 = vsel %vm3565_vm9, %v2785_v10, %v3573_v42  ;;  %v650_v1 = vsel %vm647_vm7, %v1919_v48, %v1920_v5 }
 0x1b4   :  { %v1708_v21 = vpack.c.bf16 %v1208_v56, %v1196_v20  ;;  %v1189_v61 = vsel %vm3571_vm10, %v2669_v8, %v3570_v55  ;;  %vm3572_vm3 = vmmov %vm3568_vm2  ;;  %v2962_v8 = vpop.permute.xlu0 %1937  ;;  %1693 = vmatprep.subr.bf16.mxu0 %v1692_v44  ;;  %v3008_v49 = vsel %vm647_vm7, %v1925_v7, %v1919_v48  ;;  %v1934_v41 = vunpack.i.l.bf16 %v2880_v17  ;;  %v3017_v56 = vpop.permute.xlu1 %1952 }
 0x1b5   :  { %v1193_v60 = vsel %vm3572_vm3, %v1189_v61, %v2739_v36  ;;  %vm3575_vm13 = vmmov %vm3565_vm9  ;;  %v1205_v36 = vsel %vm3568_vm2, %v1201_v23, %v3576_v40  ;;  %v1252_v57 = vrot.slane %v2900_v16, 6  ;;  %v1930_v46 = vunpack.i.h.bf16 %v2888_v15 }
 0x1b6   :  { %v1191_v45 = vsel %vm3575_vm13, %v2655_v12, %v3574_v3  ;;  %1709 = vmatprep.subr.bf16.mxu1 %v1708_v21  ;;  %vm3578_vm8 = vmmov %vm3565_vm9  ;;  %v1694_v4 = vpack.c.bf16 %v1205_v36, %v1193_v60  ;;  %vm3582_vm9 = vcmp.lt.s32.totalorder %v2135_v28, 14  ;;  %vm3583_vm13 = vcmp.lt.s32.totalorder %v2133_v27, 14 }
 0x1b7   :  { %v1203_v10 = vsel %vm3578_vm8, %v2765_v14, %v3577_v63  ;;  %vm3579_vm10 = vmmov %vm3568_vm2  ;;  %v666_v43 = vsel %vm3582_vm9, %v648_v30, 0.0  ;;  %vm3591_vm9 = vcmp.lt.s32.totalorder %v2131_v26, 14  ;;  %v1929_v20 = vunpack.i.l.bf16 %v2888_v15 }
 0x1b8   :  { %v1195_v12 = vsel %vm3579_vm10, %v1191_v45, %v2729_v0  ;;  %vm3581_vm3 = vmmov %vm3568_vm2  ;;  %vm3584_vm2 = vcmp.lt.s32.totalorder %v2155_v34, 224  ;;  %v1935_v0 = vunpack.i.h.bf16 %v2880_v17  ;;  %1695 = vmatpush1.bf16.msra.mxu0 %v1694_v4  ;;  %vm3587_vm10 = vcmp.lt.s32.totalorder %v2137_v29, 14  ;;  %v3029_v2 = vpop.permute.xlu0 %1947  ;;  %v1963_v48 = vpop.permute.xlu1 %1962 }
 0x1b9   :  { %v1207_v53 = vsel %vm3581_vm3, %v1203_v10, %v3580_v37  ;;  %vm2987_vm8 = vmand %vm3584_vm2, %vm3583_vm13  ;;  %vm3588_vm3 = vcmp.lt.s32.totalorder %v2157_v35, 224  ;;  %v664_v25 = vsel %vm3591_vm9, %v650_v1, 0.0  ;;  %vm771_vm13 = vcmp.lt.s32.totalorder %v2125_v22, 4 }
 0x1ba   :  { %v1710_v54 = vpack.c.bf16 %v1207_v53, %v1195_v12  ;;  %vm2996_vm15 = vmand %vm3588_vm3, %vm3587_vm10  ;;  %vm3592_vm2 = vcmask 1041408   ;;  %v3025_v17 = vsel %vm713_vm1, %v1934_v41, %v1935_v0  ;;  %v1945_v44 = vunpack.i.h.bf16 %v2949_v39 }
 0x1bb   :  { %v3021_v7 = vsel %vm3592_vm2, %v666_v43, %v2863_v59  ;;  %v1944_v21 = vunpack.i.l.bf16 %v2949_v39  ;;  %v667_v55 = vsel %vm2996_vm15, %v3008_v49, 0.0  ;;  %v715_v59 = vsel %vm713_vm1, %v1930_v46, %v1934_v41  ;;  %vm3593_vm7 = vmmov %vm3592_vm2 }
 0x1bc   :  { %1711 = vmatpush1.bf16.msra.mxu1 %v1710_v54  ;;  %v3041_v61 = vsel %vm713_vm1, %v1929_v20, %v1930_v46  ;;  %v3045_v39 = vsel %vm3593_vm7, %v664_v25, %v2882_v47  ;;  %vm3594_vm10 = vcmp.ge.s32.totalorder %v2144_v32, 64  ;;  %vm3595_vm3 = vcmp.lt.s32.totalorder %v2155_v34, 192  ;;  %v1958_v1 = vpop.permute.xlu0 %1957  ;;  %v913_v45 = vpop.permute.xlu1 %912 }
 0x1bd   :  { %v3049_v60 = vsel %vm3594_vm10, %v715_v59, 0.0  ;;  %v3053_v42 = vsel %vm3595_vm3, %v715_v59, 0.0  ;;  %v717_v23 = vsel %vm713_vm1, %v1935_v0, %v1929_v20  ;;  %v1228_v3 = vrot.slane %v3025_v17, 4 }
 0x1be   :  { %v3061_v30 = vsel %vm681_vm4, %v717_v23, 0.0  ;;  %v3070_v63 = vsel %vm3462_vm14, %v717_v23, 0.0  ;;  %v739_v10 = vsel %vm738_vm0, %v1944_v21, %v1945_v44  ;;  %vm3596_vm1 = vcmp.lt.s32.totalorder %v2131_v26, 12 }
 0x1bf   :  { %vm3078_vm7 = vmand %vm681_vm4, %vm3596_vm1  ;;  %vm880_vm10 = vcmp.ge.s32.totalorder %v2135_v28, 8  ;;  %vm3599_vm14 = vcmp.lt.s32.totalorder %v2135_v28, 12  ;;  %vm3600_vm2 = vcmp.ge.s32.totalorder %v2144_v32, 64  ;;  %v1940_v31 = vunpack.i.h.bf16 %v2962_v8 }
 0x1c0   :  { %vm3090_vm9 = vmand %vm3600_vm2, %vm3599_vm14  ;;  %v1939_v53 = vunpack.i.l.bf16 %v2962_v8  ;;  %vm3603_vm4 = vcmp.lt.s32.totalorder %v2137_v29, 12  ;;  %v1955_v0 = vunpack.i.h.bf16 %v3017_v56  ;;  %v1954_v8 = vunpack.i.l.bf16 %v3017_v56  ;;  %v915_v40 = vpop.permute.xlu0 %914 }
 0x1c1   :  { %v3098_v43 = vsel %vm3603_vm4, %v739_v10, 0.0  ;;  %vm3604_vm1 = vmmov %vm3599_vm14  ;;  %vm878_vm2 = vcmp.ge.s32.totalorder %v2131_v26, 8  ;;  %vm924_vm4 = vcmp.lt.s32.totalorder %v2133_v27, 8  ;;  %v3116_v41 = vsel %vm738_vm0, %v1940_v31, %v1944_v21 }
 0x1c2   :  { %v859_v54 = vsel %vm3604_vm1, %v739_v10, 0.0  ;;  %vm3106_vm14 = vmand %vm3595_vm3, %vm744_vm6  ;;  %v741_v34 = vsel %vm738_vm0, %v1939_v53, %v1940_v31  ;;  %v3122_v25 = vsel %vm738_vm0, %v1945_v44, %v1939_v53  ;;  %v1950_v46 = vunpack.i.h.bf16 %v3029_v2 }
 0x1c3   :  { %vm879_vm3 = vcmp.ge.s32.totalorder %v2133_v27, 8  ;;  %vm923_vm1 = vcmp.lt.s32.totalorder %v2131_v26, 8  ;;  %v761_v56 = vsel %vm3090_vm9, %v3116_v41, 0.0  ;;  %v759_v21 = vsel %vm3078_vm7, %v3122_v25, 0.0 }
 0x1c4   :  { %v3136_v44 = vsel %vm744_vm6, %v741_v34, 0.0  ;;  %v1240_v59 = vrot.slane %v3098_v43, 2  ;;  %vm3607_vm0 = vcmask 1041408   ;;  %vm3608_vm9 = vcmp.lt.s32.totalorder %v2131_v26, 12 }
 0x1c5   :  { %v3141_v23 = vsel %vm3607_vm0, %v859_v54, %v2178_v52  ;;  %v857_v37 = vsel %vm3608_vm9, %v741_v34, 0.0  ;;  %v3148_v31 = vrot.slane %v761_v56, 2  ;;  %v3150_v5 = vrot.slane %v759_v21, 2  ;;  %vm3609_vm6 = vmmov %vm3607_vm0 }
 0x1c6   :  { %v772_v53 = vsel %vm771_vm13, %v1954_v8, %v1955_v0  ;;  %v773_v43 = vsel %vm771_vm13, %v1950_v46, %v1954_v8  ;;  %v1238_v54 = vrot.slane %v3136_v44, 2  ;;  %v1949_v10 = vunpack.i.l.bf16 %v3029_v2  ;;  %vm3611_vm7 = vmmov %vm3607_vm0 }
 0x1c7   :  { %v786_v12 = vsel %vm687_vm12, %v773_v43, 0.0  ;;  %v1965_v4 = vunpack.i.h.bf16 %v1963_v48  ;;  %v3162_v34 = vsel %vm3609_vm6, %v857_v37, %v2178_v52  ;;  %v1964_v56 = vunpack.i.l.bf16 %v1963_v48  ;;  %v3614_v37 = vld [vmem:[#allocation6_spill] sm:$0xff] }
 0x1c8   :  { %v1960_v21 = vunpack.i.h.bf16 %v1958_v1  ;;  %v1959_v36 = vunpack.i.l.bf16 %v1958_v1  ;;  %v787_v8 = vsel %vm688_vm5, %v772_v53, 0.0  ;;  %v3610_v44 = vrot.slane %v2872_v50, 6 }
 0x1c9   :  { %v774_v2 = vsel %vm771_vm13, %v1949_v10, %v1950_v46  ;;  %v775_v43 = vsel %vm771_vm13, %v1955_v0, %v1949_v10  ;;  %vm3612_vm12 = vcmp.lt.s32.totalorder %v2125_v22, 8  ;;  %vm3615_vm5 = vcmp.lt.s32.totalorder %v2125_v22, 120 }
 0x1ca   :  { %v1367_v58 = vsel %vm3611_vm7, %v786_v12, %v3610_v44  ;;  %v784_v52 = vsel %vm685_vm11, %v775_v43, 0.0  ;;  %v870_v48 = vsel %vm3612_vm12, %v1964_v56, %v1965_v4  ;;  %vm3613_vm0 = vmmov %vm3612_vm12  ;;  %v921_v50 = vsel %vm3615_vm5, %v3614_v37, %v913_v45 }
 0x1cb   :  { %v871_v1 = vsel %vm3613_vm0, %v1960_v21, %v1964_v56  ;;  %vm3616_vm9 = vcmp.ge.s32.totalorder %v2133_v27, 4  ;;  %v3186_v46 = vsel %vm880_vm10, %v870_v48, 0.0  ;;  %vm3617_vm13 = vcmp.ge.s32.totalorder %v2137_v29, 8  ;;  %vm3618_vm11 = vmmov %vm3615_vm5 }
 0x1cc   :  { %v785_v12 = vsel %vm3616_vm9, %v774_v2, 0.0  ;;  %v3190_v0 = vsel %vm3617_vm13, %v871_v1, 0.0  ;;  %v3194_v10 = vsel %vm3618_vm11, %v913_v45, %v915_v40  ;;  %vm925_vm6 = vcmp.lt.s32.totalorder %v2135_v28, 8  ;;  %vm3620_vm0 = vmmov %vm3617_vm13 }
 0x1cd   :  { %vm926_vm7 = vcmp.lt.s32.totalorder %v2137_v29, 8  ;;  %vm3619_vm12 = vcmask 1041408   ;;  %v954_v56 = vsel %vm3620_vm0, %v870_v48, 0.0  ;;  %v1335_v44 = vrot.slane %v3186_v46, 4 }
 0x1ce   :  { %v1365_v53 = vsel %vm3619_vm12, %v784_v52, %v1249_v11  ;;  %vm3621_vm5 = vcmp.lt.s32.totalorder %v2125_v22, 8  ;;  %v953_v45 = vsel %vm880_vm10, %v871_v1, 0.0  ;;  %v3214_v6 = vsel %vm924_vm4, %v921_v50, 0.0  ;;  %vm3624_vm10 = vmmov %vm3619_vm12 }
 0x1cf   :  { %v872_v2 = vsel %vm3621_vm5, %v1959_v36, %v1960_v21  ;;  %vm3622_vm9 = vmmov %vm3621_vm5  ;;  %v1288_v11 = vrot.slane %v3190_v0, 6  ;;  %v963_v48 = vsel %vm923_vm1, %v921_v50, 0.0  ;;  %v964_v46 = vsel %vm924_vm4, %v3194_v10, 0.0 }
 0x1d0   :  { %v873_v43 = vsel %vm3622_vm9, %v1965_v4, %v1959_v36  ;;  %v983_v47 = vsel %vm878_vm2, %v872_v2, 0.0  ;;  %v952_v21 = vsel %vm879_vm3, %v872_v2, 0.0  ;;  %v1321_v1 = vrot.slane %v963_v48, 6 }
 0x1d1   :  { %v895_v52 = vsel %vm879_vm3, %v873_v43, 0.0  ;;  %v951_v36 = vsel %vm878_vm2, %v873_v43, 0.0  ;;  %v1333_v4 = vrot.slane %v983_v47, 4  ;;  %v1310_v0 = vrot.slane %v3214_v6, 2  ;;  %vm3625_vm2 = vmmov %vm3624_vm10 }
 0x1d2   :  { %v1286_v15 = vrot.slane %v895_v52, 6  ;;  %v3623_v20 = vrot.slane %v2822_v38, 6  ;;  %v1368_v47 = vsel %vm3625_vm2, %v787_v8, %v1252_v57  ;;  %vm3626_vm3 = vmmov %vm3625_vm2  ;;  %v1322_v43 = vrot.slane %v964_v46, 6 }
 0x1d3   :  { %v1389_v2 = vsel %vm3626_vm3, %v951_v36, %v1321_v1  ;;  %vm3627_vm4 = vcmask 1043456   ;;  %vm3630_vm12 = vcmask 1045504   ;;  %v3633_v57 = vrot.slane %v2851_v18, 6  ;;  %vm3635_vm0 = vmmov %vm3625_vm2 }
 0x1d4   :  { %v1356_v50 = vsel %vm3624_vm10, %v667_v55, %v3623_v20  ;;  %vm3628_vm13 = vmmov %vm3627_vm4  ;;  %v3631_v55 = vrot.slane %v3070_v63, 2  ;;  %v3634_v20 = vsel %vm2987_vm8, %v3002_v33, 0.0  ;;  %v3640_v48 = vrot.slane %v3049_v60, 4 }
 0x1d5   :  { %v1360_v27 = vsel %vm3627_vm4, %v1356_v50, %v1228_v3  ;;  %v1372_v38 = vsel %vm3628_vm13, %v1368_v47, %v2885_v51  ;;  %vm3629_vm11 = vmmov %vm3627_vm4  ;;  %v1354_v8 = vsel %vm3635_vm0, %v3634_v20, %v3633_v57  ;;  %v917_v3 = vpop.permute.xlu1 %916  ;;  %v3636_v51 = vrot.slane %v3041_v61, 4 }
 0x1d6   :  { %v1393_v19 = vsel %vm3629_vm11, %v1389_v2, %v1333_v4  ;;  %v1364_v49 = vsel %vm3630_vm12, %v1360_v27, %v1240_v59  ;;  %vm3632_vm15 = vmmov %vm3630_vm12  ;;  %v3638_v59 = vrot.slane %v2892_v24, 6  ;;  %v3645_v4 = vrot.slane %v2826_v13, 4 }
 0x1d7   :  { %v1376_v16 = vsel %vm3632_vm15, %v1372_v38, %v3631_v55  ;;  %vm3637_vm5 = vmmov %vm3627_vm4  ;;  %v3646_v24 = vrot.slane %v3053_v42, 2  ;;  %v3657_v47 = vrot.slane %v3061_v30, 4  ;;  %v3665_v30 = vrot.slane %v3041_v61, 2 }
 0x1d8   :  { %v1712_v6 = vpack.c.bf16 %v1376_v16, %v1364_v49  ;;  %v1358_v52 = vsel %vm3637_vm5, %v1354_v8, %v3636_v51  ;;  %vm3639_vm9 = vmmov %vm3635_vm0  ;;  %v1371_v1 = vsel %vm3627_vm4, %v1367_v58, %v3645_v4  ;;  %vm3652_vm0 = vcmp.lt.s32.totalorder %v2137_v29, 12  ;;  %v3675_v16 = vld [vmem:[#allocation3_spill] sm:$0xff] }
 0x1d9   :  { %v1366_v63 = vsel %vm3639_vm9, %v785_v12, %v3638_v59  ;;  %vm3641_vm10 = vmmov %vm3627_vm4  ;;  %v3648_v12 = vrot.slane %v3025_v17, 2  ;;  %vm3653_vm5 = vcmp.lt.s32.totalorder %v2157_v35, 192  ;;  %v3659_v35 = vrot.slane %v2859_v62, 4  ;;  %v3374_v26 = vpop.permute.xlu1 %1585 }
 0x1da   :  { %v1359_v18 = vsel %vm3641_vm10, %v3021_v7, %v3640_v48  ;;  %vm3642_vm2 = vmmov %vm3630_vm12  ;;  %1713 = vmatprep.subr.bf16.mxu1 %v1712_v6  ;;  %vm3650_vm12 = vcmp.lt.s32.totalorder %v2125_v22, 120  ;;  %vm3656_vm10 = vcmask 1041408   ;;  %v3676_v57 = vrot.slane %v3675_v16, 2 }
 0x1db   :  { %v1362_v14 = vsel %vm3642_vm2, %v1358_v52, %v1238_v54  ;;  %vm3643_vm8 = vmmov %vm3627_vm4  ;;  %v919_v54 = vsel %vm3650_vm12, %v915_v40, %v917_v3  ;;  %v1390_v40 = vsel %vm3656_vm10, %v952_v21, %v1322_v43  ;;  %v3661_v21 = vsel %vm3106_vm14, %v3116_v41, 0.0 }
 0x1dc   :  { %v1370_v33 = vsel %vm3643_vm8, %v1366_v63, %v2865_v9  ;;  %vm3644_vm3 = vmmov %vm3642_vm2  ;;  %v942_v58 = vsel %vm926_vm7, %v919_v54, 0.0  ;;  %v965_v42 = vsel %vm925_vm6, %v919_v54, 0.0  ;;  %v1968_v54 = vld [vmem:[%s3428_s0] sm:$0xff] }
 0x1dd   :  { %v1363_v36 = vsel %vm3644_vm3, %v1359_v18, %v3148_v31  ;;  %vm3647_vm13 = vmmov %vm3642_vm2  ;;  %v1323_v46 = vrot.slane %v965_v42, 6  ;;  %v3690_v18 = vld [vmem:[#allocation5_spill] sm:$0xff] }
 0x1de   :  { %v1374_v60 = vsel %vm3647_vm13, %v1370_v33, %v3646_v24  ;;  %vm3649_vm11 = vmmov %vm3642_vm2  ;;  %v1401_v24 = vld [vmem:[%s3433_s2] sm:$0xff] }
 0x1df   :  { %v1375_v7 = vsel %vm3649_vm11, %v1371_v1, %v3648_v12  ;;  %vm3651_vm15 = vmmov %vm3650_vm12  ;;  %v1696_v31 = vpack.c.bf16 %v1374_v60, %v1362_v14  ;;  %v3691_v14 = vrot.slane %v3690_v18, 2  ;;  %v3694_v1 = vmov 0.0   ;;  %v1402_v12 = vld [vmem:[%s3433_s2 + $0x8] sm:$0x3] }
 0x1e0   :  { %v922_v9 = vsel %vm3651_vm15, %v917_v3, %v3614_v37  ;;  %v1714_v13 = vpack.c.bf16 %v1375_v7, %v1363_v36  ;;  %vm3294_vm9 = vmand %vm3653_vm5, %vm3652_vm0  ;;  %v1312_v37 = vrot.slane %v942_v58, 2  ;;  %v3682_v3 = vld [vmem:[#allocation4_spill] sm:$0xff]  ;;  %v1601_v7 = vpop.permute.xlu1 %1600 }
 0x1e1   :  { %v966_v22 = vsel %vm926_vm7, %v922_v9, 0.0  ;;  %1697 = vmatprep.subr.bf16.mxu0 %v1696_v31  ;;  %vm3658_vm2 = vmmov %vm3627_vm4  ;;  %v860_v32 = vsel %vm3294_vm9, %v3122_v25, 0.0  ;;  %v3683_v6 = vrot.slane %v3682_v3, 4  ;;  %v1013_v60 = vsel %vm925_vm6, %v922_v9, 0.0 }
 0x1e2   :  { %1715 = vmatpush1.bf16.msra.mxu1 %v1714_v13  ;;  %v1324_v50 = vrot.slane %v966_v22, 6  ;;  %v1357_v2 = vsel %vm3658_vm2, %v3045_v39, %v3657_v47  ;;  %vm3660_vm8 = vmmov %vm3658_vm2  ;;  %v3667_v39 = vld [vmem:[#allocation2_spill] sm:$0xff]  ;;  %v1969_v13 = vld [vmem:[%s3428_s0 + $0x8] sm:$0xff] }
 0x1e3   :  { %v1369_v27 = vsel %vm3660_vm8, %v1365_v53, %v3659_v35  ;;  %vm3662_vm3 = vmmov %vm3656_vm10  ;;  %v3668_v55 = vrot.slane %v3667_v39, 4  ;;  %v1970_v22 = vld [vmem:[%s3428_s0 + $0x10] sm:$0xff] }
 0x1e4   :  { %v1378_v29 = vsel %vm3662_vm3, %v3661_v21, %v1286_v15  ;;  %vm3663_vm7 = vmmov %vm3662_vm3 }
 0x1e5   :  { %v1391_v43 = vsel %vm3663_vm7, %v953_v45, %v1323_v46  ;;  %vm3664_vm4 = vmmov %vm3649_vm11  ;;  %v3672_v45 = vld [vmem:[#allocation7_spill] sm:$0xff] }
 0x1e6   :  { %v1361_v38 = vsel %vm3664_vm4, %v1357_v2, %v3150_v5  ;;  %vm3666_vm13 = vmmov %vm3664_vm4  ;;  %v1971_v2 = vld [vmem:[%s3428_s0 + $0x18] sm:$0xff] }
 0x1e7   :  { %v1373_v49 = vsel %vm3666_vm13, %v1369_v27, %v3665_v30  ;;  %vm3669_vm11 = vmmov %vm3658_vm2  ;;  %v1629_v27 = vpop.permute.xlu1 %1628 }
 0x1e8   :  { %v1382_v62 = vsel %vm3669_vm11, %v1378_v29, %v3668_v55  ;;  %vm3670_vm14 = vmmov %vm3662_vm3  ;;  %v1698_v53 = vpack.c.bf16 %v1373_v49, %v1361_v38  ;;  %v1973_v55 = vld [vmem:[%s3428_s0 + $0x28] sm:$0x3] }
 0x1e9   :  { %v1392_v41 = vsel %vm3670_vm14, %v954_v56, %v1324_v50  ;;  %vm3671_vm12 = vmmov %vm3658_vm2  ;;  %v3680_v56 = vld [vmem:[#allocation8_spill] sm:$0xff] }
 0x1ea   :  { %v1395_v15 = vsel %vm3671_vm12, %v1391_v43, %v1335_v44  ;;  %vm3673_vm15 = vmmov %vm3658_vm2  ;;  %1699 = vmatpush1.bf16.msra.mxu0 %v1698_v53  ;;  %v1972_v43 = vld [vmem:[%s3428_s0 + $0x20] sm:$0x3] }
 0x1eb   :  { %v1394_v5 = vsel %vm3673_vm15, %v1390_v40, %v3672_v45  ;;  %vm3674_vm0 = vmmov %vm3658_vm2  ;;  %vm1403_vm15 = vcmask 539648  }
 0x1ec   :  { %v1381_v61 = vsel %vm3674_vm0, %v3162_v34, %v3672_v45  ;;  %vm3677_vm5 = vmmov %vm3664_vm4 }
 0x1ed   :  { %v1397_v20 = vsel %vm3677_vm5, %v1393_v19, %v3676_v57  ;;  %vm3678_vm10 = vmmov %vm3662_vm3 }
 0x1ee   :  { %v1380_v8 = vsel %vm3678_vm10, %v860_v32, %v1288_v11  ;;  %vm3679_vm9 = vmmov %vm3664_vm4 }
 0x1ef   :  { %v1386_v25 = vsel %vm3679_vm9, %v1382_v62, %v1310_v0  ;;  %vm3681_vm2 = vmmov %vm3664_vm4 }
 0x1f0   :  { %v1398_v44 = vsel %vm3681_vm2, %v1394_v5, %v3680_v56  ;;  %vm3684_vm8 = vmmov %vm3674_vm0 }
 0x1f1   :  { %v1384_v51 = vsel %vm3684_vm8, %v1380_v8, %v3683_v6  ;;  %vm3685_vm3 = vmmov %vm3674_vm0  ;;  %v1700_v34 = vpack.c.bf16 %v1398_v44, %v1386_v25 }
 0x1f2   :  { %v1396_v52 = vsel %vm3685_vm3, %v1392_v41, %v3672_v45  ;;  %vm3686_vm7 = vmmov %vm3681_vm2 }
 0x1f3   :  { %v1385_v59 = vsel %vm3686_vm7, %v1381_v61, %v3680_v56  ;;  %vm3687_vm4 = vmmov %vm3681_vm2  ;;  %1701 = vmatprep.subr.bf16.mxu0 %v1700_v34 }
 0x1f4   :  { %v1388_v19 = vsel %vm3687_vm4, %v1384_v51, %v1312_v37  ;;  %vm3688_vm13 = vmmov %vm3681_vm2  ;;  %v1702_v0 = vpack.c.bf16 %v1397_v20, %v1385_v59 }
 0x1f5   :  { %v1400_v11 = vsel %vm3688_vm13, %v1396_v52, %v3680_v56  ;;  %vm3689_vm11 = vmmov %vm3674_vm0  ;;  %v1974_v52 = vld [vmem:[%s3428_s0 + $0x30] sm:$0x3] }
 0x1f6   :  { %v1716_v63 = vpack.c.bf16 %v1400_v11, %v1388_v19  ;;  %v1383_v48 = vsel %vm3689_vm11, %v3141_v23, %v3672_v45  ;;  %vm3692_vm14 = vmmov %vm3681_vm2  ;;  %1703 = vmatpush1.bf16.msra.mxu0 %v1702_v0  ;;  %v1011_v23 = vsel %vm923_vm1, %v3194_v10, 0.0  ;;  %v1581_v10 = vpop.permute.xlu0 %1580  ;;  %v1975_v11 = vld [vmem:[%s3428_s0 + $0x38] sm:$0x3] }
 0x1f7   :  { %v1399_v33 = vsel %vm3692_vm14, %v1395_v15, %v3691_v14  ;;  %vm3693_vm12 = vmmov %vm3681_vm2  ;;  %1438 = vmatprep.subr.mxu0 %v3694_v1 }
 0x1f8   :  { %v1387_v36 = vsel %vm3693_vm12, %v1383_v48, %v3680_v56  ;;  %1717 = vmatprep.subr.bf16.mxu1 %v1716_v63  ;;  %vm3695_vm0 = vmmov %vm3678_vm10 }
 0x1f9   :  { %v1718_v4 = vpack.c.bf16 %v1399_v33, %v1387_v36  ;;  %vm3696_vm5 = vmmov %vm3695_vm0 }
 0x1fa   :  { %1670 = vmatpush1.msk.msra.mxu0 %vm3695_vm0, %v1011_v23  ;;  %v1606_v40 = vpop.permute.xlu0 %1605 }
 0x1fb   :  { %1719 = vmatpush1.bf16.msra.mxu1 %v1718_v4  ;;  %1671 = vmatmul.mubr.msk.f32.vlgmr.msra.gmra.mrb[2].mxu0 %vm1403_vm15, %v1401_v24 }
 0x1fc   :  { %1515 = vmatprep.subr.mxu1 %v3694_v1  ;;  %1492 = vmatprep.mubr.f32.mxu0 %v3694_v1 }
 0x1fe   :  { %v1634_v3 = vpop.permute.xlu0 %1633 }
 0x1ff   :  { %1673 = vmatpush1.msk.msra.mxu1 %vm3696_vm5, %v1013_v60  ;;  %1672 = vmatmul.mubr.msk.f32.gmra.mrb[4].mxu0 %vm1403_vm15, %v1402_v12 }
 0x200   :  { %1674 = vmatmul.mubr.msk.f32.vlgmr.msra.gmra.mrb[2].mxu1 %vm1403_vm15, %v1401_v24 }
 0x201   :  { %1569 = vmatprep.mubr.f32.mxu1 %v3694_v1 }
 0x204   :  { %1675 = vmatmul.mubr.msk.f32.gmra.mrb[4].mxu1 %vm1403_vm15, %v1402_v12 }
 0x2ce   :  { %v1488_v28 = vpop.f32.mrb[2].mxu0 }
 0x2cf   :  { %v1489_v9 = vadd.f32 %v1968_v54, %v1488_v28  ;;  %v1490_v31 = vpop.f32.mrb[3].mxu0 }
 0x2d0   :  { %v1491_v58 = vadd.f32 %v1969_v13, %v1490_v31 }
 0x2d1   :  { %v1588_v17 = vmul.f32 %v1581_v10, %v1489_v9 }
 0x2d2   :  { %v1589_v50 = vmul.f32 %v1581_v10, %v1491_v58  ;;  %v1494_v47 = vpop.f32.mrb[4].mxu0 }
 0x2d3   :  { %v1565_v42 = vpop.f32.mrb[2].mxu1  ;;  %v1608_v21 = vadd.f32 %v1601_v7, %v1588_v17  ;;  %v1495_v38 = vadd.f32 %v1972_v43, %v1494_v47  ;;  %v1496_v30 = vpop.f32.mrb[5].mxu0 }
 0x2d4   :  { %v1566_v37 = vadd.f32 %v1970_v22, %v1565_v42  ;;  %v1567_v46 = vpop.f32.mrb[3].mxu1  ;;  %v1609_v49 = vadd.f32 %v1601_v7, %v1589_v50  ;;  %v1497_v62 = vadd.f32 %v1973_v55, %v1496_v30 }
 0x2d5   :  { %v1568_v35 = vadd.f32 %v1971_v2, %v1567_v46  ;;  %v1592_v15 = vmul.f32 %v3374_v26, %v1495_v38  ;;  %vm1616_vm1 = vcmp.ge.f32.partialorder %v1608_v21, 0.0  ;;  %v1636_v53 = vmul.f32 %v1629_v27, %v1608_v21 }
 0x2d6   :  { %v1590_v29 = vmul.f32 %v1581_v10, %v1566_v37  ;;  %v1593_v61 = vmul.f32 %v3374_v26, %v1497_v62  ;;  %vm1617_vm6 = vcmp.ge.f32.partialorder %v1609_v49, 0.0  ;;  %v1637_v16 = vmul.f32 %v1629_v27, %v1609_v49 }
 0x2d7   :  { %v1591_v39 = vmul.f32 %v1581_v10, %v1568_v35  ;;  %v1571_v32 = vpop.f32.mrb[4].mxu1  ;;  %v1612_v57 = vadd.f32 %v1606_v40, %v1592_v15  ;;  %v1644_v8 = vsel %vm1616_vm1, %v1608_v21, %v1636_v53 }
 0x2d8   :  { %v1610_v41 = vadd.f32 %v1601_v7, %v1590_v29  ;;  %v1573_v45 = vpop.f32.mrb[5].mxu1  ;;  %v1613_v25 = vadd.f32 %v1606_v40, %v1593_v61  ;;  %v1645_v44 = vsel %vm1617_vm6, %v1609_v49, %v1637_v16  ;;  %1652 = vst [vmem:[%s3434_s6] sm:$0xff] %v1644_v8  ;;  %v1572_v34 = vadd.f32 %v1974_v52, %v1571_v32 }
 0x2d9   :  { %v1611_v5 = vadd.f32 %v1601_v7, %v1591_v39  ;;  %vm1620_vm2 = vcmp.ge.f32.partialorder %v1612_v57, 0.0  ;;  %1653 = vst [vmem:[%s3434_s6 + $0x8] sm:$0xff] %v1645_v44  ;;  %v1640_v51 = vmul.f32 %v1634_v3, %v1612_v57  ;;  %v1574_v0 = vadd.f32 %v1975_v11, %v1573_v45 }
 0x2da   :  { %vm1618_vm10 = vcmp.ge.f32.partialorder %v1610_v41, 0.0  ;;  %v1638_v20 = vmul.f32 %v1629_v27, %v1610_v41  ;;  %vm1621_vm8 = vcmp.ge.f32.partialorder %v1613_v25, 0.0  ;;  %v1641_v19 = vmul.f32 %v1634_v3, %v1613_v25 }
 0x2db   :  { %vm1619_vm9 = vcmp.ge.f32.partialorder %v1611_v5, 0.0  ;;  %v1639_v56 = vmul.f32 %v1629_v27, %v1611_v5  ;;  %v1648_v63 = vsel %vm1620_vm2, %v1612_v57, %v1640_v51  ;;  %v1594_v48 = vmul.f32 %v3374_v26, %v1572_v34 }
 0x2dc   :  { %v1646_v6 = vsel %vm1618_vm10, %v1610_v41, %v1638_v20  ;;  %v1649_v18 = vsel %vm1621_vm8, %v1613_v25, %v1641_v19  ;;  %1656 = vst [vmem:[%s3434_s6 + $0x20] sm:$0x3] %v1648_v63  ;;  %v1595_v14 = vmul.f32 %v3374_v26, %v1574_v0 }
 0x2dd   :  { %v1647_v59 = vsel %vm1619_vm9, %v1611_v5, %v1639_v56  ;;  %1654 = vst [vmem:[%s3434_s6 + $0x10] sm:$0xff] %v1646_v6  ;;  %1657 = vst [vmem:[%s3434_s6 + $0x28] sm:$0x3] %v1649_v18  ;;  %v1614_v33 = vadd.f32 %v1606_v40, %v1594_v48 }
 0x2de   :  { %1655 = vst [vmem:[%s3434_s6 + $0x18] sm:$0xff] %v1647_v59  ;;  %v1615_v36 = vadd.f32 %v1606_v40, %v1595_v14 }
 0x2df   :  { %vm1622_vm3 = vcmp.ge.f32.partialorder %v1614_v33, 0.0  ;;  %v1642_v4 = vmul.f32 %v1634_v3, %v1614_v33 }
 0x2e0   :  { %vm1623_vm7 = vcmp.ge.f32.partialorder %v1615_v36, 0.0  ;;  %v1643_v1 = vmul.f32 %v1634_v3, %v1615_v36 }
 0x2e1   :  { %v1650_v24 = vsel %vm1622_vm3, %v1614_v33, %v1642_v4 }
 0x2e2   :  { %1658 = vst [vmem:[%s3434_s6 + $0x30] sm:$0x3] %v1650_v24  ;;  %v1651_v23 = vsel %vm1623_vm7, %v1615_v36, %v1643_v1 }
 0x2e3   :  { %1659 = vst [vmem:[%s3434_s6 + $0x38] sm:$0x3] %v1651_v23 }

</bundles_post_ra>
